<compile_context>
chip_gen: v7x
topology: tpu7x:2x2x1
jax: 0.10.0
libtpu: 0.0.40
codegen_flags: <defaults>
</compile_context>

<pallas_src>
import math
import functools

import jax
import jax.numpy as jnp
from jax.experimental import pallas as pl
from jax.experimental.pallas import tpu as pltpu


def _attn_dropout_kernel(dropout_p, seed_ref, q_ref, k_ref, v_ref, o_ref,
                         kbf_ref, vbf_ref):
    # q_ref: (tq, D) f32   k_ref: (S, D) f32   v_ref: (D, S) f32
    # o_ref: (tq, S) f32
    # kbf_ref: (D, S) bf16 scratch (= K^T)   vbf_ref: (D, S) bf16 scratch (= V)
    d = q_ref.shape[-1]
    inv_scale = 1.0 / math.sqrt(float(d))

    # Once per batch (qi == 0): cast K/V to bf16 and pre-transpose K, so the
    # per-q-tile loop does no repeated VALU casts or XLU transposes.  K/V
    # index_maps are qi-invariant, so the f32 windows are DMA'd once per batch.
    @pl.when(pl.program_id(1) == 0)
    def _():
        kbf_ref[...] = k_ref[...].T.astype(jnp.bfloat16)   # (D, S) == K^T
        vbf_ref[...] = v_ref[...].astype(jnp.bfloat16)     # (D, S)

    # Fold 1/sqrt(D) into the small (tq, D) q tile; bf16 operands for the MXU.
    q = (q_ref[...] * inv_scale).astype(jnp.bfloat16)       # (tq, D)

    # QK^T as a plain (tq, D) @ (D, S) MXU matmul with f32 accumulation.
    s = jnp.dot(q, kbf_ref[...], preferred_element_type=jnp.float32)  # (tq, S)

    # Numerically-stable softmax; elementwise math stays f32
    # (v5e has no bf16 VPU/EUP).
    m = jnp.max(s, axis=-1, keepdims=True)
    e = jnp.exp(s - m)
    denom = jnp.sum(e, axis=-1, keepdims=True)               # (tq, 1)

    p_drop = float(dropout_p)
    if 0.0 < p_drop < 1.0:
        # Generic dropout path (not bit-comparable with torch's RNG stream).
        keep = 1.0 - p_drop
        # Fold 1/keep into the (tq,1) reciprocal; cast to bf16 *before* masking
        # so the (tq, S) select runs on packed bf16 vregs.
        p = (e * pl.reciprocal(denom * keep, approx=True)).astype(jnp.bfloat16)
        tile = pl.program_id(0) * pl.num_programs(1) + pl.program_id(1)
        # Mix the tile index with a large odd constant (0x9E3779B9 as int32) so
        # adjacent tiles do not get adjacent PRNG seeds.
        pltpu.prng_seed(seed_ref[0] + tile * jnp.int32(-1640531527))
        bits = pltpu.bitcast(pltpu.prng_random_bits(p.shape), jnp.uint32)
        thresh = jnp.uint32(keep * 4294967295.0)
        p = jnp.where(bits <= thresh, p, jnp.bfloat16(0.0))
    else:
        # dropout_p == 0 (dropout_p >= 1 is short-circuited in the wrapper).
        p = (e * pl.reciprocal(denom, approx=True)).astype(jnp.bfloat16)

    # P @ V, bf16 operands / f32 accumulation on the MXU.
    out = jnp.dot(p, vbf_ref[...], preferred_element_type=jnp.float32)  # (tq, S)
    o_ref[...] = out.astype(o_ref.dtype)


def attention_dropout(x1, x2, x3, dropout_p, seed=0, tq=None):
    B, S, D = x1.shape
    assert x2.shape == (B, S, D)
    assert x3.shape == (B, D, S)
    assert S == D, "final matmul requires S == D for the module's shape pattern"

    if float(dropout_p) >= 1.0:
        # torch.nn.functional.dropout(x, p=1.0, training=True) -> exact zeros.
        # Skip the kernel entirely: attention compute would be dead work and the
        # q/k/v DMAs pure wasted HBM bandwidth.
        return jnp.zeros((B, S, S), jnp.float32)

    if tq is None:
        if S <= 512:
            tq = S            # single MXU-filling tile, no per-step overhead
        elif S % 256 == 0:
            tq = 256          # fills the 256-wide v6e/v7x MXU
        elif S % 128 == 0:
            tq = 128
        else:
            tq = S
    assert S % tq == 0

    # Explicit VMEM budget: double-buffered f32 K/V windows + bf16 K^T/V scratch
    # + double-buffered q/out tiles, with slack.  Floor 32 MiB, cap 64 MiB
    # (v7x physical VMEM).
    # TODO(synk): for very large S (budget exceeds the cap, ~S >= 2k on v7x),
    # switch to flash-style online-softmax K/V tiling instead of full residency.
    vmem_need = (
        2 * 2 * S * D * 4                 # K + V BlockSpec windows, double-buffered f32
        + 2 * D * S * 2                   # bf16 K^T and V scratch
        + 2 * 2 * (tq * D + tq * S) * 4   # q and out tiles, double-buffered f32
        + (2 << 20)                       # slack
    )
    vmem_limit = int(min(max(vmem_need, 32 << 20), 64 << 20))

    seed_arr = jnp.array([seed], dtype=jnp.int32)
    kernel = functools.partial(_attn_dropout_kernel, float(dropout_p))

    return pl.pallas_call(
        kernel,
        out_shape=jax.ShapeDtypeStruct((B, S, S), jnp.float32),
        grid_spec=pltpu.PrefetchScalarGridSpec(
            num_scalar_prefetch=1,
            grid=(B, S // tq),
            in_specs=[
                # leading batch dim squeezed -> kernel sees 2-D refs
                pl.BlockSpec((None, tq, D), lambda b, qi, seed: (b, qi, 0)),
                pl.BlockSpec((None, S, D), lambda b, qi, seed: (b, 0, 0)),
                pl.BlockSpec((None, D, S), lambda b, qi, seed: (b, 0, 0)),
            ],
            out_specs=pl.BlockSpec((None, tq, S), lambda b, qi, seed: (b, qi, 0)),
            scratch_shapes=[
                pltpu.VMEM((D, S), jnp.bfloat16),   # K^T, filled at qi == 0
                pltpu.VMEM((D, S), jnp.bfloat16),   # V,   filled at qi == 0
            ],
        ),
        compiler_params=pltpu.CompilerParams(
            # batch axis parallel (megacore); qi axis arbitrary so the per-batch
            # scratch fill at qi == 0 is sequentialized with the later qi tiles.
            dimension_semantics=("parallel", "arbitrary"),
            vmem_limit_bytes=vmem_limit,
        ),
    )(seed_arr, x1, x2, x3)


def _reference(x1, x2, x3, dropout_p):
    # Pure-JAX reference for the deterministic cases (p == 0 and p >= 1).
    B, S, D = x1.shape
    if float(dropout_p) >= 1.0:
        return jnp.zeros((B, S, x3.shape[-1]), jnp.float32)
    s = jnp.einsum("bqd,bkd->bqk", x1, x2,
                   preferred_element_type=jnp.float32) / math.sqrt(float(D))
    p = jax.nn.softmax(s, axis=-1)
    return jnp.einsum("bqk,bkd->bqd", p, x3, preferred_element_type=jnp.float32)


if __name__ == "__main__":
    # Small shapes consistent with the module's (B,S,D)/(B,S,D)/(B,D,S) pattern.
    B, S, D = 2, 256, 256
    dropout_p = 1  # the module's shipped configuration

    key = jax.random.PRNGKey(0)
    k1, k2, k3 = jax.random.split(key, 3)
    x1 = jax.random.normal(k1, (B, S, D), dtype=jnp.float32)
    x2 = jax.random.normal(k2, (B, S, D), dtype=jnp.float32)
    x3 = jax.random.normal(k3, (B, D, S), dtype=jnp.float32)

    # 1) Shipped config (dropout_p == 1): short-circuit to exact zeros.
    out_p1 = jax.block_until_ready(attention_dropout(x1, x2, x3, dropout_p))
    assert out_p1.shape == (B, S, S)
    assert bool(jnp.all(out_p1 == 0.0))

    # 2) Non-degenerate path (dropout_p == 0), default tq == S == 256
    #    (single MXU-filling query tile per batch).
    out_p0 = jax.block_until_ready(attention_dropout(x1, x2, x3, 0.0))
    ref_p0 = _reference(x1, x2, x3, 0.0)
    assert out_p0.shape == (B, S, S)
    max_err = float(jnp.max(jnp.abs(out_p0 - ref_p0)))
    assert bool(jnp.allclose(out_p0, ref_p0, atol=2e-2, rtol=2e-2)), max_err

    # 3) Multi-tile path (tq < S): exercises the once-per-batch K/V bf16
    #    scratch fill and the "arbitrary" qi axis.
    out_tiled = jax.block_until_ready(attention_dropout(x1, x2, x3, 0.0, tq=128))
    max_err_t = float(jnp.max(jnp.abs(out_tiled - ref_p0)))
    assert bool(jnp.allclose(out_tiled, ref_p0, atol=2e-2, rtol=2e-2)), max_err_t

    print("KERNEL_OK")
</pallas_src>

<mosaic_0001>
module attributes {stable_mosaic.version = 11 : i64} {
  func.func @_attn_dropout_kernel(%arg0: i32, %arg1: i32, %arg2: memref<1xi32, #tpu.memory_space<smem>>, %arg3: memref<1x256x256xf32, #tpu.memory_space<vmem>>, %arg4: memref<1x256x256xf32, #tpu.memory_space<vmem>>, %arg5: memref<1x256x256xf32, #tpu.memory_space<vmem>>, %arg6: memref<1x256x256xf32, #tpu.memory_space<vmem>>, %arg7: memref<256x256xbf16, #tpu.memory_space<vmem>>, %arg8: memref<256x256xbf16, #tpu.memory_space<vmem>>) attributes {dimension_semantics = [#tpu.dimension_semantics<parallel>, #tpu.dimension_semantics<arbitrary>], iteration_bounds = array<i64: 2, 1>, scalar_prefetch = 1 : i64, scratch_operands = 2 : i64, tpu.core_type = #tpu.core_type<tc>, window_params = [{transform_indices = @transform_0, window_bounds = array<i64: 1, 256, 256>}, {transform_indices = @transform_1, window_bounds = array<i64: 1, 256, 256>}, {transform_indices = @transform_2, window_bounds = array<i64: 1, 256, 256>}, {transform_indices = @transform_3, window_bounds = array<i64: 1, 256, 256>}]} {
    %c0_i32 = arith.constant 0 : i32
    %0 = arith.cmpi eq, %arg1, %c0_i32 : i32
    %1 = arith.extui %0 : i1 to i32
    %c0_i32_0 = arith.constant 0 : i32
    %2 = arith.cmpi ne, %1, %c0_i32_0 : i32
    scf.if %2 {
      %c0_14 = arith.constant 0 : index
      %c0_15 = arith.constant 0 : index
      %c0_16 = arith.constant 0 : index
      %26 = vector.load %arg4[%c0_14, %c0_15, %c0_16] : memref<1x256x256xf32, #tpu.memory_space<vmem>>, vector<1x256x256xf32>
      %27 = vector.shape_cast %26 : vector<1x256x256xf32> to vector<256x256xf32>
      %28 = tpu.transpose %27, [1, 0] : vector<256x256xf32> -> vector<256x256xf32>
      %29 = arith.truncf %28 : vector<256x256xf32> to vector<256x256xbf16>
      %c0_17 = arith.constant 0 : index
      %c0_18 = arith.constant 0 : index
      %30 = vector.load %arg7[%c0_17, %c0_18] : memref<256x256xbf16, #tpu.memory_space<vmem>>, vector<256x256xbf16>
      tpu.vector_store %arg7[%c0_17, %c0_18], %29 {strides = array<i32>} : memref<256x256xbf16, #tpu.memory_space<vmem>>, vector<256x256xbf16>,
      %c0_19 = arith.constant 0 : index
      %c0_20 = arith.constant 0 : index
      %c0_21 = arith.constant 0 : index
      %31 = vector.load %arg5[%c0_19, %c0_20, %c0_21] : memref<1x256x256xf32, #tpu.memory_space<vmem>>, vector<1x256x256xf32>
      %32 = vector.shape_cast %31 : vector<1x256x256xf32> to vector<256x256xf32>
      %33 = arith.truncf %32 : vector<256x256xf32> to vector<256x256xbf16>
      %c0_22 = arith.constant 0 : index
      %c0_23 = arith.constant 0 : index
      %34 = vector.load %arg8[%c0_22, %c0_23] : memref<256x256xbf16, #tpu.memory_space<vmem>>, vector<256x256xbf16>
      tpu.vector_store %arg8[%c0_22, %c0_23], %33 {strides = array<i32>} : memref<256x256xbf16, #tpu.memory_space<vmem>>, vector<256x256xbf16>,
    } else {
    }
    %c0 = arith.constant 0 : index
    %c0_1 = arith.constant 0 : index
    %c0_2 = arith.constant 0 : index
    %3 = vector.load %arg3[%c0, %c0_1, %c0_2] : memref<1x256x256xf32, #tpu.memory_space<vmem>>, vector<1x256x256xf32>
    %4 = vector.shape_cast %3 : vector<1x256x256xf32> to vector<256x256xf32>
    %cst = arith.constant 6.250000e-02 : f32
    %5 = vector.broadcast %cst : f32 to vector<256x256xf32>
    %6 = arith.mulf %4, %5 : vector<256x256xf32>
    %7 = arith.truncf %6 : vector<256x256xf32> to vector<256x256xbf16>
    %c0_3 = arith.constant 0 : index
    %c0_4 = arith.constant 0 : index
    %8 = vector.load %arg7[%c0_3, %c0_4] : memref<256x256xbf16, #tpu.memory_space<vmem>>, vector<256x256xbf16>
    %cst_5 = arith.constant dense<0.000000e+00> : vector<256x256xf32>
    %9 = tpu.matmul %7, %8, %cst_5 {dimension_numbers = #tpu.dot_dimension_numbers<[1], [0], [0], [1], [0, 0, 1, 1], [], []>} : vector<256x256xbf16>, vector<256x256xbf16>, vector<256x256xf32> -> vector<256x256xf32>
    %cst_6 = arith.constant dense<0xFF800000> : vector<256xf32>
    %10 = vector.multi_reduction <maximumf>, %9, %cst_6 [1] : vector<256x256xf32> to vector<256xf32>
    %11 = vector.shape_cast %10 : vector<256xf32> to vector<256x1xf32>
    %12 = vector.broadcast %11 : vector<256x1xf32> to vector<256x256xf32>
    %13 = arith.subf %9, %12 : vector<256x256xf32>
    %14 = math.exp %13 : vector<256x256xf32>
    %cst_7 = arith.constant dense<0.000000e+00> : vector<256xf32>
    %15 = vector.multi_reduction <add>, %14, %cst_7 [1] : vector<256x256xf32> to vector<256xf32>
    %16 = vector.shape_cast %15 : vector<256xf32> to vector<256x1xf32>
    %17 = tpu.reciprocal %16 {approx = true} : vector<256x1xf32> -> vector<256x1xf32>
    %18 = vector.broadcast %17 : vector<256x1xf32> to vector<256x256xf32>
    %19 = arith.mulf %14, %18 : vector<256x256xf32>
    %20 = arith.truncf %19 : vector<256x256xf32> to vector<256x256xbf16>
    %c0_8 = arith.constant 0 : index
    %c0_9 = arith.constant 0 : index
    %21 = vector.load %arg8[%c0_8, %c0_9] : memref<256x256xbf16, #tpu.memory_space<vmem>>, vector<256x256xbf16>
    %cst_10 = arith.constant dense<0.000000e+00> : vector<256x256xf32>
    %22 = tpu.matmul %20, %21, %cst_10 {dimension_numbers = #tpu.dot_dimension_numbers<[1], [0], [0], [1], [0, 0, 1, 1], [], []>} : vector<256x256xbf16>, vector<256x256xbf16>, vector<256x256xf32> -> vector<256x256xf32>
    %c0_11 = arith.constant 0 : index
    %c0_12 = arith.constant 0 : index
    %c0_13 = arith.constant 0 : index
    %23 = vector.load %arg6[%c0_11, %c0_12, %c0_13] : memref<1x256x256xf32, #tpu.memory_space<vmem>>, vector<1x256x256xf32>
    %24 = vector.shape_cast %23 : vector<1x256x256xf32> to vector<256x256xf32>
    %25 = vector.shape_cast %22 : vector<256x256xf32> to vector<1x256x256xf32>
    tpu.vector_store %arg6[%c0_11, %c0_12, %c0_13], %25 {strides = array<i32>} : memref<1x256x256xf32, #tpu.memory_space<vmem>>, vector<1x256x256xf32>,
    return
  }
  func.func @transform_0(%arg0: i32, %arg1: i32, %arg2: memref<1xi32, #tpu.memory_space<smem>>) -> (i32, i32, i32) {
    %c0_i32 = arith.constant 0 : i32
    %c0_i32_0 = arith.constant 0 : i32
    return %arg0, %arg1, %c0_i32 : i32, i32, i32
  }
  func.func @transform_1(%arg0: i32, %arg1: i32, %arg2: memref<1xi32, #tpu.memory_space<smem>>) -> (i32, i32, i32) {
    %c0_i32 = arith.constant 0 : i32
    %c0_i32_0 = arith.constant 0 : i32
    %c0_i32_1 = arith.constant 0 : i32
    return %arg0, %c0_i32, %c0_i32_0 : i32, i32, i32
  }
  func.func @transform_2(%arg0: i32, %arg1: i32, %arg2: memref<1xi32, #tpu.memory_space<smem>>) -> (i32, i32, i32) {
    %c0_i32 = arith.constant 0 : i32
    %c0_i32_0 = arith.constant 0 : i32
    %c0_i32_1 = arith.constant 0 : i32
    return %arg0, %c0_i32, %c0_i32_0 : i32, i32, i32
  }
  func.func @transform_3(%arg0: i32, %arg1: i32, %arg2: memref<1xi32, #tpu.memory_space<smem>>) -> (i32, i32, i32) {
    %c0_i32 = arith.constant 0 : i32
    %c0_i32_0 = arith.constant 0 : i32
    return %arg0, %arg1, %c0_i32 : i32, i32, i32
  }
}

</mosaic_0001>

<bundles_post_ra>
// kernel: tpu_custom_call.1
= control target key start
LH: loop header
LB: loop body
LE: loop exit
PB: predicated region body
PF: predicated region fallthrough
CT: control target
= control target key end

     0   :  { %s3889_s0 = inlined_call_operand.<no memory space> [shape: s32[1], index: 0, kind: input, shape index: {}]   ;;  %s3890_s1 = inlined_call_operand.hbm [shape: f32[2,256,256], index: 1, kind: input, shape index: {}]   ;;  %s3891_s2 = inlined_call_operand.hbm [shape: f32[2,256,256], index: 2, kind: input, shape index: {}]   ;;  %s3892_s3 = inlined_call_operand.hbm [shape: f32[2,256,256], index: 3, kind: input, shape index: {}]   ;;  %s3893_s4 = inlined_call_operand.hbm [shape: f32[2,256,256], index: 4, kind: output, shape index: {}]  }
   0x1   :  { %3936 = sst [smem:[#allocation38_spill]] %s3891_s2 }
   0x2   :  { %10 = vsyncpa [#allocation7], 0 }
   0x3   :  { %12 = vsyncpa [#allocation7 + $0x1], 0 }
   0x4   :  { %13 = vsyncpa [#allocation10], 0 }
   0x5   :  { %15 = vsyncpa [#allocation10 + $0x1], 0 }
   0x6   :  { %16 = vsyncpa [#allocation8], 0 }
   0x7   :  { %18 = vsyncpa [#allocation8 + $0x1], 0  ;;  %s2740_s15 = smov 0   ;;  %s2742_s0 = smov 0  }
   0x8   :  { %s2744_s16 = smov 0   ;;  %s2746_s17 = smov 0  }
   0x9   :  { %s2748_s18 = smov 0   ;;  %s2750_s19 = smov 0  }
   0xa LB: > { %3937 = sst [smem:[#allocation16_spill]] %s2701_s18  ;;  %s2771_s20 = sadd.s32 4294967295, %s2705_s19   ;;  %s2705_s19 = sphi %s2750_s19, %s24_s19   ;;  %s2701_s18 = sphi %s2748_s18, %s4034_s18   ;;  %s2697_s17 = sphi %s2746_s17, %s4033_s17   ;;  %s2693_s16 = sphi %s2744_s16, %s4037_s16   ;;  %s2689_s0 = sphi %s2742_s0, %s4036_s0   ;;  %s2685_s15 = sphi %s2740_s15, %s4035_s15  }
   0xb   : > { %s2011_s21 = sadd.s32 4294967294, %s2705_s19   ;;  %s36_s22 = sadd.s32 1, %s2701_s18 }
   0xc   : > { %s45_s23 = sadd.s32 1, %s2693_s16  ;;  %p38_p0 = scmp.ge.s32.totalorder %s36_s22, 2 }
   0xd   : > { %p52_p1 = scmp.ne.s32.totalorder %s2693_s16, %s2689_s0  ;;  %p53_p2 = scmp.eq.s32.totalorder %s2705_s19, 0 }
   0xe   : > { %p58_p3 = scmp.ne.s32.totalorder %s2689_s0, %s2685_s15  ;;  %s4039_s22 = smov (%p38_p0, %s36_s22), 0 }
   0xf   : > { %3938 = sst [smem:[#allocation17_spill]] %s4039_s22  ;;  %p2783_p4 = por %p53_p2, %p52_p1 }
  0x10   : > { %p59_p5 = scmp.eq.s32.totalorder %s2771_s20, 0  ;;  %s40_s25 = ssub.s32 %s2701_s18, %s4039_s22 }
  0x11   : > { %p136_p6 = scmp.eq.s32.totalorder %s2771_s20, 1  ;;  %p43_p7 = scmp.eq.s32.totalorder %s40_s25, 0 }
  0x12   : > { %p2791_p8 = por %p59_p5, %p58_p3  ;;  %p142_p10 = scmp.eq.s32.totalorder %s2011_s21, 1 }
  0x13   : > { %p2795_p9 = por %p136_p6, %p52_p1  ;;  %p2059_p13 = scmp.lt.s32.totalorder %s2705_s19, 2 }
  0x14   : > { %s3940_s26 = scalar_select %p2791_p8, 1, 0 }
  0x15   : > { %s3941_s27 = scalar_select %p2795_p9, 1, 0 }
  0x16   : > { %s2800_s28 = scalar_select %p43_p7, %s2693_s16, %s45_s23  }
  0x17   : > { %p2802_p11 = por %p142_p10, %p58_p3  ;;  %s3896_s30 = sand.u32 1, %s2693_s16  }
  0x18   : > { %3942 = sst [smem:[#allocation18_spill]] %s2800_s28  ;;  %s2811_s5 = sshll.u32 %s3896_s30, 9 }
  0x19   : > { %s3943_s29 = scalar_select %p2802_p11, 1, 0 }
  0x1a   : > { %s2814_s6 = sshll.u32 %s2701_s18, 13  ;;  %p2818_p0 = pnand %p2059_p13, %p2783_p4 }
  0x1b   : > { %s186_s8 = sand.u32 1, %s2705_s19   ;;  %s3945_s2 = sld [smem:[#allocation38_spill]] }
  0x1c   : > { %s190_s12 = scalar_lea.vmem [#allocation9], %s2811_s5  ;;  %s2834_s14 = scalar_lea.sflag [#allocation10], %s186_s8 }
  0x1d   : > { %s197_s13 = sshll.u32 %s190_s12, 4  ;;  %p2840_p4 = pneg %p2818_p0  ;;  %s2831_s13 = int_to_ptr.vmem [resolvable:$true] %s197_s13 }
  0x21   : > { %s2827_s11 = scalar_lea.hbm %s3945_s2, %s2814_s6  ;;  %s2534_s9 = scalar_lea.hbm %s3945_s2, 16384 }
  0x22   : > { %s2529_s21 = scalar_lea.hbm %s2827_s11, 8192  ;;  %p2535_p7 = scmp.lt.u32.totalorder %s2827_s11, %s3945_s2 }
  0x23   : > { %p2530_p3 = scmp.ne.s32.totalorder %s2827_s11, %s2529_s21  ;;  %p2536_p10 = scmp.lt.u32.totalorder %s2534_s9, %s2529_s21 }
  0x24   : > { %p2538_p12 = scmp.lt.u32.totalorder %s2529_s21, %s2827_s11 }
  0x25   : > { %p2532_p5 = pnand %p2840_p4, %p2530_p3  ;;  %p2537_p13 = por %p2536_p10, %p2535_p7 }
  0x27   : > { %p2533_p6 = pneg %p2532_p5  ;;  %p2539_p1 = por %p2538_p12, %p2537_p13 }
  0x29   : > { %p2540_p2 = pnand %p2539_p1, %p2533_p6 }
  0x2b   : > { %2543 = shalt.err (!%p2540_p2)
}
  0x2c   : > { %s2544_s8 = scalar_lea.vmem %s2831_s13, 8192  ;;  %s2707_s24 = smov [#allocation9]  }
  0x2d   : > { %p2545_p3 = scmp.ne.s32.totalorder %s2831_s13, %s2544_s8  ;;  %s2549_s25 = sshll.u32 %s2707_s24, 4  ;;  %s2550_s25 = int_to_ptr.vmem [resolvable:$false] %s2549_s25 }
  0x2e   : > { %s2551_s10 = scalar_lea.vmem %s2550_s25, 16384  ;;  %p2552_p9 = scmp.lt.s32.totalorder %s2831_s13, %s2550_s25 }
  0x2f   : > { %p2547_p5 = pnand %p2545_p3, %p2840_p4  ;;  %p2553_p8 = scmp.lt.s32.totalorder %s2551_s10, %s2544_s8 }
  0x31   : > { %p2548_p11 = pneg %p2547_p5  ;;  %p2554_p7 = por %p2553_p8, %p2552_p9 }
  0x33   : > { %p2555_p10 = pnand %p2554_p7, %p2548_p11 }
  0x35   : > { %2558 = shalt.err (!%p2555_p10)
}
  0x36   : > { %s3897_s21 = smov 256   ;;  %s3899_s9 = smov 16  }
  0x37   : > { %2051 = dma.hbm_to_vmem [thread:$0]  (!%p2818_p0), %s2827_s11, 8192, %s2831_s13, %s2834_s14, %s3897_s21, %s3897_s21, %s3899_s9  }
  0x38   : > { %p3947_p8 = scmp.lt.s32.totalorder %s2705_s19, 3  ;;  %p3948_p9 = scmp.ge.s32.totalorder %s2705_s19, 1 }
  0x39   : > { %s2879_s25 = scalar_lea.hbm %s3890_s1, %s2814_s6  ;;  %s166_s10 = scalar_lea.vmem [#allocation6], %s2811_s5 }
  0x3a   : > { %p2871_p11 = pnand %p3948_p9, %p3947_p8  ;;  %s176_s30 = sshll.u32 %s166_s10, 4  ;;  %s2882_s30 = int_to_ptr.vmem [resolvable:$true] %s176_s30 }
  0x3b   : > { %s2888_s21 = scalar_lea.hbm %s3892_s3, %s2814_s6  ;;  %s3950_s9 = sand.u32 1, %s2693_s16  }
  0x3c   : > { %s3949_s12 = scalar_select %p2871_p11, 1, 0 }
  0x3d   : > { %s2892_s2 = scalar_lea.sflag [#allocation7], %s3950_s9  ;;  %s2559_s22 = scalar_lea.hbm %s2879_s25, 8192 }
  0x3e   : > { %p2560_p12 = scmp.ne.s32.totalorder %s2879_s25, %s2559_s22  ;;  %s2564_s18 = scalar_lea.hbm %s3890_s1, 16384 }
  0x3f   : > { %p2565_p6 = scmp.lt.u32.totalorder %s2879_s25, %s3890_s1  ;;  %p2566_p13 = scmp.lt.u32.totalorder %s2564_s18, %s2559_s22 }
  0x40   : > { %p2562_p1 = pnand %p2560_p12, %p2840_p4  ;;  %p2568_p5 = scmp.lt.u32.totalorder %s2559_s22, %s2879_s25 }
  0x41   : > { %p2567_p3 = por %p2566_p13, %p2565_p6 }
  0x42   : > { %p2563_p2 = pneg %p2562_p1 }
  0x43   : > { %p2569_p7 = por %p2568_p5, %p2567_p3 }
  0x45   : > { %p2570_p10 = pnand %p2569_p7, %p2563_p2 }
  0x47   : > { %2573 = shalt.err (!%p2570_p10)
}
  0x48   : > { %s2574_s6 = scalar_lea.vmem %s2882_s30, 8192  ;;  %s2710_s9 = smov [#allocation6]  }
  0x49   : > { %p2575_p8 = scmp.ne.s32.totalorder %s2882_s30, %s2574_s6  ;;  %s2579_s11 = sshll.u32 %s2710_s9, 4  ;;  %s2580_s11 = int_to_ptr.vmem [resolvable:$false] %s2579_s11 }
  0x4a   : > { %s2581_s28 = scalar_lea.vmem %s2580_s11, 16384  ;;  %p2582_p1 = scmp.lt.s32.totalorder %s2882_s30, %s2580_s11 }
  0x4b   : > { %p2577_p9 = pnand %p2575_p8, %p2840_p4  ;;  %p2583_p11 = scmp.lt.s32.totalorder %s2581_s28, %s2574_s6 }
  0x4d   : > { %p2578_p12 = pneg %p2577_p9  ;;  %p2584_p6 = por %p2583_p11, %p2582_p1 }
  0x4f   : > { %p2585_p13 = pnand %p2584_p6, %p2578_p12 }
  0x51   : > { %2588 = shalt.err (!%p2585_p13)
}
  0x52   : > { %s3951_s18 = smov 16   ;;  %s3952_s22 = smov 256  }
  0x53   : > { %2048 = dma.hbm_to_vmem [thread:$0]  (!%p2818_p0), %s2879_s25, 8192, %s2882_s30, %s2892_s2, %s3952_s22, %s3952_s22, %s3951_s18  }
  0x54   : > { %s211_s13 = scalar_lea.vmem [#allocation11], %s2811_s5  ;;  %s2589_s24 = scalar_lea.hbm %s2888_s21, 8192 }
  0x55   : > { %s218_s8 = sshll.u32 %s211_s13, 4  ;;  %p2590_p11 = scmp.ne.s32.totalorder %s2888_s21, %s2589_s24  ;;  %s2920_s8 = int_to_ptr.vmem [resolvable:$true] %s218_s8 }
  0x56   : > { %s2594_s9 = scalar_lea.hbm %s3892_s3, 16384  ;;  %p2595_p5 = scmp.lt.u32.totalorder %s2888_s21, %s3892_s3 }
  0x57   : > { %p2592_p2 = pnand %p2590_p11, %p2840_p4  ;;  %p2596_p7 = scmp.lt.u32.totalorder %s2594_s9, %s2589_s24 }
  0x58   : > { %p2598_p8 = scmp.lt.u32.totalorder %s2589_s24, %s2888_s21 }
  0x59   : > { %p2593_p3 = pneg %p2592_p2  ;;  %p2597_p10 = por %p2596_p7, %p2595_p5 }
  0x5b   : > { %p2599_p9 = por %p2598_p8, %p2597_p10 }
  0x5d   : > { %p2600_p12 = pnand %p2599_p9, %p2593_p3 }
  0x5f   : > { %2603 = shalt.err (!%p2600_p12)
}
  0x60   : > { %s2604_s2 = scalar_lea.vmem %s2920_s8, 8192  ;;  %s2711_s30 = smov [#allocation11]  }
  0x61   : > { %p2605_p1 = scmp.ne.s32.totalorder %s2920_s8, %s2604_s2  ;;  %s2609_s5 = sshll.u32 %s2711_s30, 4  ;;  %s2610_s5 = int_to_ptr.vmem [resolvable:$false] %s2609_s5 }
  0x62   : > { %s2611_s25 = scalar_lea.vmem %s2610_s5, 16384  ;;  %p2612_p11 = scmp.lt.s32.totalorder %s2920_s8, %s2610_s5 }
  0x63   : > { %p2607_p6 = pnand %p2605_p1, %p2840_p4  ;;  %p2613_p2 = scmp.lt.s32.totalorder %s2611_s25, %s2604_s2 }
  0x65   : > { %p2608_p13 = pneg %p2607_p6  ;;  %p2614_p5 = por %p2613_p2, %p2612_p11 }
  0x67   : > { %p2615_p7 = pnand %p2614_p5, %p2608_p13 }
  0x69   : > { %2618 = shalt.err (!%p2615_p7)
}
  0x6a   : > { %2054 = dma.hbm_to_vmem [thread:$0]  (!%p2818_p0), %s2888_s21, 8192, %s2920_s8, %s2834_s14, %s3952_s22, %s3952_s22, %s3951_s18  }
  0x6b   : > { %p3953_p4 = scmp.ne.s32.totalorder %s3949_s12, 0 }
  0x6d   : > { %230 = sbr.rel (%p3953_p4) target bundleno = 1311 (0x51f), region = 32 }
  0x74   : > { %s2950_s23 = sand.u32 1, %s2689_s0   ;;  %p3954_p3 = scmp.ne.s32.totalorder %s3940_s26, 0 }
  0x75   : > { %s2953_s13 = sshll.u32 %s2950_s23, 9  ;;  %s233_s7 = scalar_lea.sflag [#allocation7], %s2950_s23 }
  0x76   : > { %s2957_s24 = scalar_lea.vmem [#allocation6], %s2953_s13 }
  0x77   : > { %2672 = dma.done.wait (%p3954_p3), %s233_s7, 8192  }
  0x78   : > { %2674 = vsyncadd (%p3954_p3), %s233_s7, 4294959104  ;;  %s241_s14 = sand.u32 1, %s2771_s20   ;;  %s2965_s12 = scalar_lea.vmem [#allocation9], %s2953_s13 }
  0x79   : > { %s242_s21 = scalar_lea.sflag [#allocation10], %s241_s14 }
  0x7a   : > { %2676 = dma.done.wait (%p3954_p3), %s242_s21, 16384  }
  0x7b   : > { %2678 = vsyncadd (%p3954_p3), %s242_s21, 4294950912  ;;  %v293_v0 = vld [vmem:[%s2965_s12] sm:$0xff]  ;;  %v295_v2 = vld [vmem:[%s2965_s12 + $0x10] sm:$0xff]  ;;  %s3356_s20 = scalar_lea.vmem [#allocation11], %s2953_s13  ;;  %s3767_s26 = scalar_lea.vmem [#allocation12], %s2953_s13 }
  0x7c   : > { %v325_v1 = vld [vmem:[%s2965_s12 + $0x100] sm:$0xff]  ;;  %v327_v4 = vld [vmem:[%s2965_s12 + $0x110] sm:$0xff]  ;;  %v294_v8 = vld [vmem:[%s2965_s12 + $0x8] sm:$0xff]  ;;  %s2036_s18 = sshll.u32 %s2697_s17, 13  ;;  %s1880_s22 = sshll.u32 %s3767_s26, 4  ;;  %s3837_s22 = int_to_ptr.vmem [resolvable:$true] %s1880_s22 }
  0x7d   : > { %v2113_v3 = vpack.i.bf16 %v293_v0, %v325_v1  ;;  %v2115_v5 = vpack.i.bf16 %v295_v2, %v327_v4  ;;  %v297_v6 = vld [vmem:[%s2965_s12 + $0x20] sm:$0xff]  ;;  %v326_v9 = vld [vmem:[%s2965_s12 + $0x108] sm:$0xff]  ;;  %v296_v11 = vld [vmem:[%s2965_s12 + $0x18] sm:$0xff]  ;;  %s3835_s6 = scalar_lea.hbm %s3893_s4, %s2036_s18  ;;  %s1864_s17 = scalar_lea.sflag [#allocation8], %s2950_s23 }
  0x7e   : > { %v329_v7 = vld [vmem:[%s2965_s12 + $0x120] sm:$0xff]  ;;  %v2225_v10 = vpack.i.bf16 %v294_v8, %v326_v9  ;;  %v328_v12 = vld [vmem:[%s2965_s12 + $0x118] sm:$0xff]  ;;  %v299_v14 = vld [vmem:[%s2965_s12 + $0x30] sm:$0xff]  ;;  %s2619_s9 = scalar_lea.vmem %s3837_s22, 8192  ;;  %p4029_p10 = scmp.ne.s32.totalorder %s3941_s27, 0 }
  0x7f   : > { %2114 = vxpose.xlu0.b32.start [1/16] %v2113_v3, 128  ;;  %v2117_v13 = vpack.i.bf16 %v297_v6, %v329_v7  ;;  %v331_v15 = vld [vmem:[%s2965_s12 + $0x130] sm:$0xff]  ;;  %v2227_v16 = vpack.i.bf16 %v296_v11, %v328_v12  ;;  %v298_v17 = vld [vmem:[%s2965_s12 + $0x28] sm:$0xff]  ;;  %v301_v20 = vld [vmem:[%s2965_s12 + $0x40] sm:$0xff]  ;;  %p2620_p0 = scmp.ne.s32.totalorder %s3837_s22, %s2619_s9  ;;  %s2712_s11 = smov [#allocation12]  }
  0x80   : > { %2226 = vxpose.xlu1.b32.start [1/16] %v2225_v10, 128  ;;  %v330_v18 = vld [vmem:[%s2965_s12 + $0x128] sm:$0xff]  ;;  %v2119_v19 = vpack.i.bf16 %v299_v14, %v331_v15  ;;  %v333_v21 = vld [vmem:[%s2965_s12 + $0x140] sm:$0xff]  ;;  %v300_v23 = vld [vmem:[%s2965_s12 + $0x38] sm:$0xff]  ;;  %s2623_s28 = sshll.u32 %s2712_s11, 4  ;;  %s2624_s28 = int_to_ptr.vmem [resolvable:$false] %s2623_s28 }
  0x81   : > { %v2229_v22 = vpack.i.bf16 %v298_v17, %v330_v18  ;;  %v332_v24 = vld [vmem:[%s2965_s12 + $0x138] sm:$0xff]  ;;  %v2121_v25 = vpack.i.bf16 %v301_v20, %v333_v21  ;;  %v303_v26 = vld [vmem:[%s2965_s12 + $0x50] sm:$0xff]  ;;  %v302_v29 = vld [vmem:[%s2965_s12 + $0x48] sm:$0xff]  ;;  %p2621_p8 = pnand %p2620_p0, %p4029_p10  ;;  %s2625_s2 = scalar_lea.vmem %s2624_s28, 16384 }
  0x82   : > { %v335_v27 = vld [vmem:[%s2965_s12 + $0x150] sm:$0xff]  ;;  %v2231_v28 = vpack.i.bf16 %v300_v23, %v332_v24  ;;  %v334_v30 = vld [vmem:[%s2965_s12 + $0x148] sm:$0xff]  ;;  %v305_v32 = vld [vmem:[%s2965_s12 + $0x60] sm:$0xff]  ;;  %p2626_p12 = scmp.lt.s32.totalorder %s3837_s22, %s2624_s28  ;;  %p2627_p1 = scmp.lt.s32.totalorder %s2625_s2, %s2619_s9 }
  0x83   : > { %2116 = vxpose.xlu0.b32.cont [2/16] %v2115_v5, 128  ;;  %v2123_v31 = vpack.i.bf16 %v303_v26, %v335_v27  ;;  %v337_v33 = vld [vmem:[%s2965_s12 + $0x160] sm:$0xff]  ;;  %v2233_v34 = vpack.i.bf16 %v302_v29, %v334_v30  ;;  %v304_v35 = vld [vmem:[%s2965_s12 + $0x58] sm:$0xff]  ;;  %v307_v38 = vld [vmem:[%s2965_s12 + $0x70] sm:$0xff]  ;;  %p2622_p9 = pneg %p2621_p8 }
  0x84   : > { %2228 = vxpose.xlu1.b32.cont [2/16] %v2227_v16, 128  ;;  %v336_v36 = vld [vmem:[%s2965_s12 + $0x158] sm:$0xff]  ;;  %v2125_v37 = vpack.i.bf16 %v305_v32, %v337_v33  ;;  %v339_v39 = vld [vmem:[%s2965_s12 + $0x170] sm:$0xff]  ;;  %v306_v41 = vld [vmem:[%s2965_s12 + $0x68] sm:$0xff]  ;;  %p2628_p6 = por %p2627_p1, %p2626_p12 }
  0x85   : > { %v2235_v40 = vpack.i.bf16 %v304_v35, %v336_v36  ;;  %v338_v42 = vld [vmem:[%s2965_s12 + $0x168] sm:$0xff]  ;;  %v2127_v43 = vpack.i.bf16 %v307_v38, %v339_v39  ;;  %v309_v44 = vld [vmem:[%s2965_s12 + $0x80] sm:$0xff]  ;;  %v308_v47 = vld [vmem:[%s2965_s12 + $0x78] sm:$0xff] }
  0x86   : > { %v341_v45 = vld [vmem:[%s2965_s12 + $0x180] sm:$0xff]  ;;  %v2237_v46 = vpack.i.bf16 %v306_v41, %v338_v42  ;;  %v340_v48 = vld [vmem:[%s2965_s12 + $0x178] sm:$0xff]  ;;  %v311_v50 = vld [vmem:[%s2965_s12 + $0x90] sm:$0xff]  ;;  %p2629_p13 = pnand %p2628_p6, %p2622_p9 }
  0x87   : > { %2118 = vxpose.xlu0.b32.cont [3/16] %v2117_v13, 128  ;;  %v2129_v49 = vpack.i.bf16 %v309_v44, %v341_v45  ;;  %v343_v51 = vld [vmem:[%s2965_s12 + $0x190] sm:$0xff]  ;;  %v2239_v52 = vpack.i.bf16 %v308_v47, %v340_v48  ;;  %v310_v53 = vld [vmem:[%s2965_s12 + $0x88] sm:$0xff]  ;;  %v313_v56 = vld [vmem:[%s2965_s12 + $0xa0] sm:$0xff] }
  0x88   : > { %2230 = vxpose.xlu1.b32.cont [3/16] %v2229_v22, 128  ;;  %v342_v54 = vld [vmem:[%s2965_s12 + $0x188] sm:$0xff]  ;;  %v2131_v55 = vpack.i.bf16 %v311_v50, %v343_v51  ;;  %v345_v57 = vld [vmem:[%s2965_s12 + $0x1a0] sm:$0xff]  ;;  %v312_v59 = vld [vmem:[%s2965_s12 + $0x98] sm:$0xff] }
  0x89   : > { %v2241_v58 = vpack.i.bf16 %v310_v53, %v342_v54  ;;  %v344_v60 = vld [vmem:[%s2965_s12 + $0x198] sm:$0xff]  ;;  %v2133_v61 = vpack.i.bf16 %v313_v56, %v345_v57  ;;  %v315_v62 = vld [vmem:[%s2965_s12 + $0xb0] sm:$0xff]  ;;  %v314_v1 = vld [vmem:[%s2965_s12 + $0xa8] sm:$0xff] }
  0x8a   : > { %v347_v63 = vld [vmem:[%s2965_s12 + $0x1b0] sm:$0xff]  ;;  %v2243_v0 = vpack.i.bf16 %v312_v59, %v344_v60  ;;  %v346_v2 = vld [vmem:[%s2965_s12 + $0x1a8] sm:$0xff]  ;;  %v317_v4 = vld [vmem:[%s2965_s12 + $0xc0] sm:$0xff] }
  0x8b   : > { %2120 = vxpose.xlu0.b32.cont [4/16] %v2119_v19, 128  ;;  %v2135_v3 = vpack.i.bf16 %v315_v62, %v347_v63  ;;  %v349_v5 = vld [vmem:[%s2965_s12 + $0x1c0] sm:$0xff]  ;;  %v2245_v6 = vpack.i.bf16 %v314_v1, %v346_v2  ;;  %v316_v7 = vld [vmem:[%s2965_s12 + $0xb8] sm:$0xff]  ;;  %v319_v10 = vld [vmem:[%s2965_s12 + $0xd0] sm:$0xff] }
  0x8c   : > { %2232 = vxpose.xlu1.b32.cont [4/16] %v2231_v28, 128  ;;  %v348_v8 = vld [vmem:[%s2965_s12 + $0x1b8] sm:$0xff]  ;;  %v2137_v9 = vpack.i.bf16 %v317_v4, %v349_v5  ;;  %v351_v11 = vld [vmem:[%s2965_s12 + $0x1d0] sm:$0xff]  ;;  %v318_v13 = vld [vmem:[%s2965_s12 + $0xc8] sm:$0xff] }
  0x8d   : > { %v2247_v12 = vpack.i.bf16 %v316_v7, %v348_v8  ;;  %v350_v14 = vld [vmem:[%s2965_s12 + $0x1c8] sm:$0xff]  ;;  %v2139_v15 = vpack.i.bf16 %v319_v10, %v351_v11  ;;  %v321_v16 = vld [vmem:[%s2965_s12 + $0xe0] sm:$0xff]  ;;  %v320_v19 = vld [vmem:[%s2965_s12 + $0xd8] sm:$0xff] }
  0x8e   : > { %v353_v17 = vld [vmem:[%s2965_s12 + $0x1e0] sm:$0xff]  ;;  %v2249_v18 = vpack.i.bf16 %v318_v13, %v350_v14  ;;  %v352_v20 = vld [vmem:[%s2965_s12 + $0x1d8] sm:$0xff]  ;;  %v323_v22 = vld [vmem:[%s2965_s12 + $0xf0] sm:$0xff] }
  0x8f   : > { %2122 = vxpose.xlu0.b32.cont [5/16] %v2121_v25, 128  ;;  %v2141_v21 = vpack.i.bf16 %v321_v16, %v353_v17  ;;  %v355_v23 = vld [vmem:[%s2965_s12 + $0x1f0] sm:$0xff]  ;;  %v2251_v24 = vpack.i.bf16 %v320_v19, %v352_v20  ;;  %v322_v25 = vld [vmem:[%s2965_s12 + $0xe8] sm:$0xff]  ;;  %v324_v29 = vld [vmem:[%s2965_s12 + $0xf8] sm:$0xff] }
  0x90   : > { %2234 = vxpose.xlu1.b32.cont [5/16] %v2233_v34, 128  ;;  %v354_v26 = vld [vmem:[%s2965_s12 + $0x1e8] sm:$0xff]  ;;  %v2143_v27 = vpack.i.bf16 %v323_v22, %v355_v23  ;;  %v356_v30 = vld [vmem:[%s2965_s12 + $0x1f8] sm:$0xff] }
  0x91   : > { %v2253_v28 = vpack.i.bf16 %v322_v25, %v354_v26  ;;  %v678_v32 = vld [vmem:[%s2957_s24 + $0x8] sm:$0xff]  ;;  %v680_v33 = vld [vmem:[%s2957_s24 + $0x18] sm:$0xff] }
  0x92   : > { %v742_v34 = vmul.f32 0.0625, %v678_v32  ;;  %v744_v35 = vmul.f32 0.0625, %v680_v33 }
  0x93   : > { %2124 = vxpose.xlu0.b32.cont [6/16] %v2123_v31, 128  ;;  %v2255_v31 = vpack.i.bf16 %v324_v29, %v356_v30 }
  0x94   : > { %2236 = vxpose.xlu1.b32.cont [6/16] %v2235_v40, 128  ;;  %v806_v36 = vpack.c.bf16 %v744_v35, %v742_v34 }
  0x96   : > { %901 = vmatprep.mubr.bf16.mxu0 %v806_v36 }
  0x97   : > { %2126 = vxpose.xlu0.b32.cont [7/16] %v2125_v37, 128 }
  0x98   : > { %2238 = vxpose.xlu1.b32.cont [7/16] %v2237_v46, 128 }
  0x9b   : > { %2128 = vxpose.xlu0.b32.cont [8/16] %v2127_v43, 128 }
  0x9c   : > { %2240 = vxpose.xlu1.b32.cont [8/16] %v2239_v52, 128 }
  0x9f   : > { %2130 = vxpose.xlu0.b32.cont [9/16] %v2129_v49, 128 }
  0xa0   : > { %2242 = vxpose.xlu1.b32.cont [9/16] %v2241_v58, 128 }
  0xa3   : > { %2132 = vxpose.xlu0.b32.cont [10/16] %v2131_v55, 128 }
  0xa4   : > { %2244 = vxpose.xlu1.b32.cont [10/16] %v2243_v0, 128 }
  0xa7   : > { %2134 = vxpose.xlu0.b32.cont [11/16] %v2133_v61, 128 }
  0xa8   : > { %2246 = vxpose.xlu1.b32.cont [11/16] %v2245_v6, 128 }
  0xab   : > { %2136 = vxpose.xlu0.b32.cont [12/16] %v2135_v3, 128 }
  0xac   : > { %2248 = vxpose.xlu1.b32.cont [12/16] %v2247_v12, 128 }
  0xaf   : > { %2138 = vxpose.xlu0.b32.cont [13/16] %v2137_v9, 128 }
  0xb0   : > { %2250 = vxpose.xlu1.b32.cont [13/16] %v2249_v18, 128 }
  0xb3   : > { %2140 = vxpose.xlu0.b32.cont [14/16] %v2139_v15, 128 }
  0xb4   : > { %2252 = vxpose.xlu1.b32.cont [14/16] %v2251_v24, 128 }
  0xb7   : > { %2142 = vxpose.xlu0.b32.cont [15/16] %v2141_v21, 128 }
  0xb8   : > { %2254 = vxpose.xlu1.b32.cont [15/16] %v2253_v28, 128 }
  0xbb   : > { %2144 = vxpose.xlu0.b32.end [16/16] %v2143_v27, 128 }
  0xbc   : > { %2256 = vxpose.xlu1.b32.end [16/16] %v2255_v31, 128 }
  0xff   : > { %v2145_v37 = vpop.trf.xlu0 }
 0x100   : > { %v2146_v39 = vunpack.i.l.bf16 %v2145_v37  ;;  %v2149_v40 = vunpack.i.h.bf16 %v2145_v37  ;;  %v3037_v43 = vpop.trf.xlu1 }
 0x103   : > { %v2150_v38 = vpop.trf.xlu0 }
 0x104   : > { %v2151_v41 = vunpack.i.l.bf16 %v2150_v38  ;;  %v2154_v42 = vunpack.i.h.bf16 %v2150_v38  ;;  %v3039_v47 = vpop.trf.xlu1 }
 0x106   : > { %v486_v44 = vpack.c.bf16 %v2151_v41, %v2146_v39  ;;  %v485_v45 = vpack.c.bf16 %v2154_v42, %v2149_v40 }
 0x107   : > { %v2155_v46 = vpop.trf.xlu0 }
 0x108   : > { %869 = vmatprep.subr.bf16.mxu0 %v486_v44  ;;  %v2159_v48 = vunpack.i.h.bf16 %v2155_v46  ;;  %v2156_v49 = vunpack.i.l.bf16 %v2155_v46  ;;  %v3041_v53 = vpop.trf.xlu1  ;;  %v2263_v46 = vunpack.i.l.bf16 %v3039_v47 }
 0x109   : > { %870 = vmatpush1.bf16.msra.mxu0 %v485_v45  ;;  %v2258_v45 = vunpack.i.l.bf16 %v3037_v43 }
 0x10b   : > { %v2160_v50 = vpop.trf.xlu0 }
 0x10c   : > { %v2164_v51 = vunpack.i.h.bf16 %v2160_v50  ;;  %v2161_v52 = vunpack.i.l.bf16 %v2160_v50  ;;  %v3043_v57 = vpop.trf.xlu1 }
 0x10e   : > { %v488_v54 = vpack.c.bf16 %v2161_v52, %v2156_v49  ;;  %v487_v55 = vpack.c.bf16 %v2164_v51, %v2159_v48 }
 0x10f   : > { %v2165_v56 = vpop.trf.xlu0 }
 0x110   : > { %871 = vmatprep.subr.bf16.mxu0 %v488_v54  ;;  %v2169_v58 = vunpack.i.h.bf16 %v2165_v56  ;;  %v2166_v59 = vunpack.i.l.bf16 %v2165_v56  ;;  %v3045_v63 = vpop.trf.xlu1 }
 0x111   : > { %872 = vmatpush1.bf16.msra.mxu0 %v487_v55 }
 0x113   : > { %v2170_v60 = vpop.trf.xlu0 }
 0x114   : > { %v2174_v61 = vunpack.i.h.bf16 %v2170_v60  ;;  %v2171_v62 = vunpack.i.l.bf16 %v2170_v60  ;;  %v3047_v3 = vpop.trf.xlu1  ;;  %v2268_v60 = vunpack.i.l.bf16 %v3041_v53 }
 0x116   : > { %v490_v0 = vpack.c.bf16 %v2171_v62, %v2166_v59  ;;  %v489_v1 = vpack.c.bf16 %v2174_v61, %v2169_v58  ;;  %v2261_v58 = vunpack.i.h.bf16 %v3037_v43  ;;  %v2266_v59 = vunpack.i.h.bf16 %v3039_v47 }
 0x117   : > { %v2175_v2 = vpop.trf.xlu0  ;;  %v2273_v61 = vunpack.i.l.bf16 %v3043_v57  ;;  %v502_v62 = vpack.c.bf16 %v2263_v46, %v2258_v45  ;;  %v2283_v43 = vunpack.i.l.bf16 %v3047_v3 }
 0x118   : > { %873 = vmatprep.subr.bf16.mxu0 %v490_v0  ;;  %v2179_v4 = vunpack.i.h.bf16 %v2175_v2  ;;  %v2176_v5 = vunpack.i.l.bf16 %v2175_v2  ;;  %v3049_v9 = vpop.trf.xlu1  ;;  %v2276_v2 = vunpack.i.h.bf16 %v3043_v57 }
 0x119   : > { %874 = vmatpush1.bf16.msra.mxu0 %v489_v1  ;;  %v2271_v1 = vunpack.i.h.bf16 %v3041_v53  ;;  %v504_v47 = vpack.c.bf16 %v2273_v61, %v2268_v60  ;;  %v2291_v57 = vunpack.i.h.bf16 %v3049_v9  ;;  %v685_v61 = vld [vmem:[%s2957_s24 + $0x40] sm:$0xff] }
 0x11b   : > { %v2180_v6 = vpop.trf.xlu0 }
 0x11c   : > { %v2184_v7 = vunpack.i.h.bf16 %v2180_v6  ;;  %v2181_v8 = vunpack.i.l.bf16 %v2180_v6  ;;  %v3051_v13 = vpop.trf.xlu1  ;;  %v2281_v6 = vunpack.i.h.bf16 %v3045_v63 }
 0x11e   : > { %v492_v10 = vpack.c.bf16 %v2181_v8, %v2176_v5  ;;  %v491_v11 = vpack.c.bf16 %v2184_v7, %v2179_v4  ;;  %v501_v4 = vpack.c.bf16 %v2266_v59, %v2261_v58  ;;  %v2278_v5 = vunpack.i.l.bf16 %v3045_v63 }
 0x11f   : > { %v2185_v12 = vpop.trf.xlu0  ;;  %v2286_v7 = vunpack.i.h.bf16 %v3047_v3  ;;  %v503_v8 = vpack.c.bf16 %v2276_v2, %v2271_v1  ;;  %v692_v1 = vld [vmem:[%s2957_s24 + $0x78] sm:$0xff]  ;;  %v749_v2 = vmul.f32 0.0625, %v685_v61 }
 0x120   : > { %875 = vmatprep.subr.bf16.mxu0 %v492_v10  ;;  %v2189_v14 = vunpack.i.h.bf16 %v2185_v12  ;;  %v2186_v15 = vunpack.i.l.bf16 %v2185_v12  ;;  %v3053_v19 = vpop.trf.xlu1  ;;  %v2288_v10 = vunpack.i.l.bf16 %v3049_v9  ;;  %v506_v53 = vpack.c.bf16 %v2283_v43, %v2278_v5 }
 0x121   : > { %876 = vmatpush1.bf16.msra.mxu0 %v491_v11  ;;  %v2293_v11 = vunpack.i.l.bf16 %v3051_v13  ;;  %v2296_v12 = vunpack.i.h.bf16 %v3051_v13  ;;  %v2301_v3 = vunpack.i.h.bf16 %v3053_v19  ;;  %v756_v43 = vmul.f32 0.0625, %v692_v1 }
 0x123   : > { %v2190_v16 = vpop.trf.xlu0  ;;  %v508_v63 = vpack.c.bf16 %v2293_v11, %v2288_v10  ;;  %v694_v10 = vld [vmem:[%s2957_s24 + $0x88] sm:$0xff]  ;;  %v696_v11 = vld [vmem:[%s2957_s24 + $0x98] sm:$0xff] }
 0x124   : > { %v2194_v17 = vunpack.i.h.bf16 %v2190_v16  ;;  %v2191_v18 = vunpack.i.l.bf16 %v2190_v16  ;;  %v3055_v23 = vpop.trf.xlu1 }
 0x125   : > { %v2303_v16 = vunpack.i.l.bf16 %v3055_v23 }
 0x126   : > { %v494_v20 = vpack.c.bf16 %v2191_v18, %v2186_v15  ;;  %v493_v21 = vpack.c.bf16 %v2194_v17, %v2189_v14  ;;  %v505_v14 = vpack.c.bf16 %v2286_v7, %v2281_v6  ;;  %v2298_v15 = vunpack.i.l.bf16 %v3053_v19  ;;  %v689_v7 = vld [vmem:[%s2957_s24 + $0x60] sm:$0xff] }
 0x127   : > { %v2195_v22 = vpop.trf.xlu0  ;;  %v2306_v17 = vunpack.i.h.bf16 %v3055_v23  ;;  %v507_v18 = vpack.c.bf16 %v2296_v12, %v2291_v57  ;;  %v758_v12 = vmul.f32 0.0625, %v694_v10 }
 0x128   : > { %877 = vmatprep.subr.bf16.mxu0 %v494_v20  ;;  %v2199_v24 = vunpack.i.h.bf16 %v2195_v22  ;;  %v2196_v25 = vunpack.i.l.bf16 %v2195_v22  ;;  %v3057_v29 = vpop.trf.xlu1  ;;  %v510_v9 = vpack.c.bf16 %v2303_v16, %v2298_v15 }
 0x129   : > { %878 = vmatpush1.bf16.msra.mxu0 %v493_v21  ;;  %v2308_v20 = vunpack.i.l.bf16 %v3057_v29  ;;  %v2311_v13 = vunpack.i.h.bf16 %v3057_v29 }
 0x12b   : > { %v2200_v26 = vpop.trf.xlu0 }
 0x12c   : > { %v2204_v27 = vunpack.i.h.bf16 %v2200_v26  ;;  %v2201_v28 = vunpack.i.l.bf16 %v2200_v26  ;;  %v3059_v33 = vpop.trf.xlu1 }
 0x12d   : > { %v2313_v21 = vunpack.i.l.bf16 %v3059_v33  ;;  %v2316_v22 = vunpack.i.h.bf16 %v3059_v33  ;;  %v679_v33 = vld [vmem:[%s2957_s24 + $0x10] sm:$0xff] }
 0x12e   : > { %v496_v30 = vpack.c.bf16 %v2201_v28, %v2196_v25  ;;  %v495_v31 = vpack.c.bf16 %v2204_v27, %v2199_v24  ;;  %v509_v24 = vpack.c.bf16 %v2306_v17, %v2301_v3  ;;  %v695_v3 = vld [vmem:[%s2957_s24 + $0x90] sm:$0xff]  ;;  %v698_v17 = vld [vmem:[%s2957_s24 + $0xa8] sm:$0xff] }
 0x12f   : > { %v2205_v32 = vpop.trf.xlu0  ;;  %v512_v25 = vpack.c.bf16 %v2313_v21, %v2308_v20  ;;  %v511_v28 = vpack.c.bf16 %v2316_v22, %v2311_v13  ;;  %v759_v21 = vmul.f32 0.0625, %v695_v3 }
 0x130   : > { %879 = vmatprep.subr.bf16.mxu0 %v496_v30  ;;  %v2209_v34 = vunpack.i.h.bf16 %v2205_v32  ;;  %v2206_v35 = vunpack.i.l.bf16 %v2205_v32  ;;  %v3061_v39 = vpop.trf.xlu1  ;;  %v677_v32 = vld [vmem:[%s2957_s24] sm:$0xff] }
 0x131   : > { %880 = vmatpush1.bf16.msra.mxu0 %v495_v31  ;;  %v2318_v19 = vunpack.i.l.bf16 %v3061_v39  ;;  %v2321_v26 = vunpack.i.h.bf16 %v3061_v39 }
 0x133   : > { %v2210_v36 = vpop.trf.xlu0 }
 0x134   : > { %v2214_v37 = vunpack.i.h.bf16 %v2210_v36  ;;  %v2211_v38 = vunpack.i.l.bf16 %v2210_v36  ;;  %v3063_v44 = vpop.trf.xlu1 }
 0x135   : > { %v2323_v23 = vunpack.i.l.bf16 %v3063_v44  ;;  %v2326_v27 = vunpack.i.h.bf16 %v3063_v44 }
 0x136   : > { %v498_v40 = vpack.c.bf16 %v2211_v38, %v2206_v35  ;;  %v497_v41 = vpack.c.bf16 %v2214_v37, %v2209_v34  ;;  %v682_v34 = vld [vmem:[%s2957_s24 + $0x28] sm:$0xff]  ;;  %v684_v35 = vld [vmem:[%s2957_s24 + $0x38] sm:$0xff] }
 0x137   : > { %v2215_v42 = vpop.trf.xlu0  ;;  %v514_v31 = vpack.c.bf16 %v2323_v23, %v2318_v19  ;;  %v513_v38 = vpack.c.bf16 %v2326_v27, %v2321_v26  ;;  %v748_v44 = vmul.f32 0.0625, %v684_v35  ;;  %v697_v19 = vld [vmem:[%s2957_s24 + $0xa0] sm:$0xff]  ;;  %v699_v23 = vld [vmem:[%s2957_s24 + $0xb0] sm:$0xff]  ;;  %v704_v26 = vld [vmem:[%s2957_s24 + $0xd8] sm:$0xff] }
 0x138   : > { %881 = vmatprep.subr.bf16.mxu0 %v498_v40  ;;  %v2219_v48 = vunpack.i.h.bf16 %v2215_v42  ;;  %v2216_v49 = vunpack.i.l.bf16 %v2215_v42  ;;  %v3067_v54 = vpop.trf.xlu1  ;;  %v741_v40 = vmul.f32 0.0625, %v677_v32  ;;  %v746_v42 = vmul.f32 0.0625, %v682_v34  ;;  %v703_v34 = vld [vmem:[%s2957_s24 + $0xd0] sm:$0xff]  ;;  %v706_v35 = vld [vmem:[%s2957_s24 + $0xe8] sm:$0xff] }
 0x139   : > { %882 = vmatpush1.bf16.msra.mxu0 %v497_v41  ;;  %v2328_v29 = vunpack.i.l.bf16 %v3067_v54  ;;  %v2331_v36 = vunpack.i.h.bf16 %v3067_v54  ;;  %v743_v41 = vmul.f32 0.0625, %v679_v33  ;;  %v761_v27 = vmul.f32 0.0625, %v697_v19  ;;  %v701_v33 = vld [vmem:[%s2957_s24 + $0xc0] sm:$0xff] }
 0x13b   : > { %v2220_v50 = vpop.trf.xlu0  ;;  %v805_v46 = vpack.c.bf16 %v743_v41, %v741_v40 }
 0x13c   : > { %v2224_v51 = vunpack.i.h.bf16 %v2220_v50  ;;  %v2221_v52 = vunpack.i.l.bf16 %v2220_v50  ;;  %v3073_v0 = vpop.trf.xlu1  ;;  %v683_v50 = vld [vmem:[%s2957_s24 + $0x30] sm:$0xff] }
 0x13d   : > { %v2333_v30 = vunpack.i.l.bf16 %v3073_v0  ;;  %v2336_v37 = vunpack.i.h.bf16 %v3073_v0  ;;  %v690_v0 = vld [vmem:[%s2957_s24 + $0x68] sm:$0xff] }
 0x13e   : > { %v500_v55 = vpack.c.bf16 %v2221_v52, %v2216_v49  ;;  %v499_v56 = vpack.c.bf16 %v2224_v51, %v2219_v48  ;;  %v808_v48 = vpack.c.bf16 %v748_v44, %v746_v42  ;;  %v681_v49 = vld [vmem:[%s2957_s24 + $0x20] sm:$0xff]  ;;  %v686_v51 = vld [vmem:[%s2957_s24 + $0x48] sm:$0xff]  ;;  %v688_v52 = vld [vmem:[%s2957_s24 + $0x58] sm:$0xff]  ;;  %v754_v5 = vmul.f32 0.0625, %v690_v0 }
 0x13f   : > { %v516_v39 = vpack.c.bf16 %v2333_v30, %v2328_v29  ;;  %v515_v45 = vpack.c.bf16 %v2336_v37, %v2331_v36  ;;  %v745_v54 = vmul.f32 0.0625, %v681_v49  ;;  %v752_v58 = vmul.f32 0.0625, %v688_v52  ;;  %v708_v36 = vld [vmem:[%s2957_s24 + $0xf8] sm:$0xff]  ;;  %v705_v44 = vld [vmem:[%s2957_s24 + $0xe0] sm:$0xff] }
 0x140   : > { %883 = vmatprep.subr.bf16.mxu0 %v500_v55  ;;  %v747_v55 = vmul.f32 0.0625, %v683_v50  ;;  %v812_v6 = vpack.c.bf16 %v756_v43, %v754_v5  ;;  %v768_v30 = vmul.f32 0.0625, %v704_v26  ;;  %v765_v37 = vmul.f32 0.0625, %v701_v33  ;;  %v713_v5 = vld [vmem:[%s2957_s24 + $0x120] sm:$0xff]  ;;  %v715_v43 = vld [vmem:[%s2957_s24 + $0x130] sm:$0xff] }
 0x141   : > { %884 = vmatpush1.bf16.msra.mxu0 %v499_v56  ;;  %v750_v56 = vmul.f32 0.0625, %v686_v51  ;;  %v772_v40 = vmul.f32 0.0625, %v708_v36  ;;  %v769_v49 = vmul.f32 0.0625, %v705_v44 }
 0x142   : > { %885 = vmatprep.subr.bf16.mxu0 %v502_v62  ;;  %v807_v59 = vpack.c.bf16 %v747_v55, %v745_v54  ;;  %v687_v62 = vld [vmem:[%s2957_s24 + $0x50] sm:$0xff] }
 0x143   : > { %v810_v60 = vpack.c.bf16 %v752_v58, %v750_v56  ;;  %v709_v56 = vld [vmem:[%s2957_s24 + $0x100] sm:$0xff]  ;;  %v711_v58 = vld [vmem:[%s2957_s24 + $0x110] sm:$0xff] }
 0x144   : > { %v773_v61 = vmul.f32 0.0625, %v709_v56 }
 0x145   : > { %886 = vmatpush1.bf16.msra.mxu0 %v501_v4  ;;  %v751_v4 = vmul.f32 0.0625, %v687_v62  ;;  %v775_v62 = vmul.f32 0.0625, %v711_v58 }
 0x146   : > { %887 = vmatprep.subr.bf16.mxu0 %v504_v47 }
 0x147   : > { %v809_v47 = vpack.c.bf16 %v751_v4, %v749_v2  ;;  %v821_v2 = vpack.c.bf16 %v775_v62, %v773_v61 }
 0x149   : > { %888 = vmatpush1.bf16.msra.mxu0 %v503_v8  ;;  %v691_v8 = vld [vmem:[%s2957_s24 + $0x70] sm:$0xff] }
 0x14a   : > { %889 = vmatprep.subr.bf16.mxu0 %v506_v53  ;;  %v753_v53 = vmul.f32 0.0625, %v689_v7  ;;  %v755_v57 = vmul.f32 0.0625, %v691_v8  ;;  %v777_v7 = vmul.f32 0.0625, %v713_v5  ;;  %v779_v8 = vmul.f32 0.0625, %v715_v43 }
 0x14c   : > { %v811_v15 = vpack.c.bf16 %v755_v57, %v753_v53  ;;  %v823_v53 = vpack.c.bf16 %v779_v8, %v777_v7 }
 0x14d   : > { %890 = vmatpush1.bf16.msra.mxu0 %v505_v14  ;;  %v760_v14 = vmul.f32 0.0625, %v696_v11 }
 0x14e   : > { %891 = vmatprep.subr.bf16.mxu0 %v508_v63  ;;  %v693_v63 = vld [vmem:[%s2957_s24 + $0x80] sm:$0xff] }
 0x14f   : > { %v814_v16 = vpack.c.bf16 %v760_v14, %v758_v12  ;;  %v757_v20 = vmul.f32 0.0625, %v693_v63  ;;  %v717_v12 = vld [vmem:[%s2957_s24 + $0x140] sm:$0xff]  ;;  %v719_v14 = vld [vmem:[%s2957_s24 + $0x150] sm:$0xff] }
 0x150   : > { %v781_v63 = vmul.f32 0.0625, %v717_v12  ;;  %v783_v3 = vmul.f32 0.0625, %v719_v14 }
 0x151   : > { %892 = vmatpush1.bf16.msra.mxu0 %v507_v18  ;;  %v700_v18 = vld [vmem:[%s2957_s24 + $0xb8] sm:$0xff]  ;;  %v813_v22 = vpack.c.bf16 %v759_v21, %v757_v20 }
 0x152   : > { %893 = vmatprep.subr.bf16.mxu0 %v510_v9  ;;  %v762_v9 = vmul.f32 0.0625, %v698_v17  ;;  %v764_v13 = vmul.f32 0.0625, %v700_v18  ;;  %v825_v20 = vpack.c.bf16 %v783_v3, %v781_v63 }
 0x155   : > { %894 = vmatpush1.bf16.msra.mxu0 %v509_v24  ;;  %v816_v24 = vpack.c.bf16 %v764_v13, %v762_v9  ;;  %v721_v9 = vld [vmem:[%s2957_s24 + $0x160] sm:$0xff]  ;;  %v723_v13 = vld [vmem:[%s2957_s24 + $0x170] sm:$0xff] }
 0x156   : > { %895 = vmatprep.subr.bf16.mxu0 %v512_v25  ;;  %v702_v25 = vld [vmem:[%s2957_s24 + $0xc8] sm:$0xff]  ;;  %v785_v19 = vmul.f32 0.0625, %v721_v9 }
 0x157   : > { %v766_v29 = vmul.f32 0.0625, %v702_v25 }
 0x159   : > { %896 = vmatpush1.bf16.msra.mxu0 %v511_v28  ;;  %v763_v28 = vmul.f32 0.0625, %v699_v23  ;;  %v818_v32 = vpack.c.bf16 %v768_v30, %v766_v29  ;;  %v787_v23 = vmul.f32 0.0625, %v723_v13  ;;  %v725_v29 = vld [vmem:[%s2957_s24 + $0x180] sm:$0xff]  ;;  %v727_v30 = vld [vmem:[%s2957_s24 + $0x190] sm:$0xff] }
 0x15a   : > { %897 = vmatprep.subr.bf16.mxu0 %v514_v31  ;;  %v789_v33 = vmul.f32 0.0625, %v725_v29 }
 0x15b   : > { %v815_v31 = vpack.c.bf16 %v763_v28, %v761_v27  ;;  %v827_v27 = vpack.c.bf16 %v787_v23, %v785_v19 }
 0x15d   : > { %898 = vmatpush1.bf16.msra.mxu0 %v513_v38  ;;  %v767_v38 = vmul.f32 0.0625, %v703_v34  ;;  %v791_v34 = vmul.f32 0.0625, %v727_v30 }
 0x15e   : > { %899 = vmatprep.subr.bf16.mxu0 %v516_v39  ;;  %v770_v39 = vmul.f32 0.0625, %v706_v35 }
 0x15f   : > { %v817_v41 = vpack.c.bf16 %v767_v38, %v765_v37  ;;  %v829_v37 = vpack.c.bf16 %v791_v34, %v789_v33 }
 0x160   : > { %v820_v42 = vpack.c.bf16 %v772_v40, %v770_v39  ;;  %v729_v39 = vld [vmem:[%s2957_s24 + $0x1a0] sm:$0xff]  ;;  %v731_v40 = vld [vmem:[%s2957_s24 + $0x1b0] sm:$0xff] }
 0x161   : > { %900 = vmatpush1.bf16.msra.mxu0 %v515_v45  ;;  %v707_v45 = vld [vmem:[%s2957_s24 + $0xf0] sm:$0xff]  ;;  %v793_v44 = vmul.f32 0.0625, %v729_v39 }
 0x162   : > { %v771_v50 = vmul.f32 0.0625, %v707_v45  ;;  %v795_v45 = vmul.f32 0.0625, %v731_v40 }
 0x164   : > { %902 = vmatmul.mubr.bf16.vlgmr.msra.gmra.mrb[0].mxu0 %v805_v46  ;;  %v710_v46 = vld [vmem:[%s2957_s24 + $0x108] sm:$0xff]  ;;  %v819_v54 = vpack.c.bf16 %v771_v50, %v769_v49  ;;  %v831_v49 = vpack.c.bf16 %v795_v45, %v793_v44 }
 0x165   : > { %911 = vmatprep.mubr.bf16.mxu0 %v808_v48  ;;  %v712_v48 = vld [vmem:[%s2957_s24 + $0x118] sm:$0xff]  ;;  %v774_v51 = vmul.f32 0.0625, %v710_v46 }
 0x166   : > { %v776_v52 = vmul.f32 0.0625, %v712_v48 }
 0x168   : > { %v822_v55 = vpack.c.bf16 %v776_v52, %v774_v51  ;;  %v733_v51 = vld [vmem:[%s2957_s24 + $0x1c0] sm:$0xff]  ;;  %v735_v52 = vld [vmem:[%s2957_s24 + $0x1d0] sm:$0xff] }
 0x169   : > { %v797_v56 = vmul.f32 0.0625, %v733_v51  ;;  %v799_v58 = vmul.f32 0.0625, %v735_v52 }
 0x16b   : > { %v833_v61 = vpack.c.bf16 %v799_v58, %v797_v56 }
 0x16c   : > { %912 = vmatmul.mubr.bf16.gmra.mrb[4].mxu0 %v807_v59  ;;  %v714_v59 = vld [vmem:[%s2957_s24 + $0x128] sm:$0xff] }
 0x16d   : > { %921 = vmatprep.mubr.bf16.mxu0 %v810_v60  ;;  %v716_v60 = vld [vmem:[%s2957_s24 + $0x138] sm:$0xff]  ;;  %v778_v0 = vmul.f32 0.0625, %v714_v59 }
 0x16e   : > { %v780_v1 = vmul.f32 0.0625, %v716_v60 }
 0x170   : > { %v824_v4 = vpack.c.bf16 %v780_v1, %v778_v0  ;;  %v737_v0 = vld [vmem:[%s2957_s24 + $0x1e0] sm:$0xff]  ;;  %v739_v1 = vld [vmem:[%s2957_s24 + $0x1f0] sm:$0xff] }
 0x174   : > { %922 = vmatmul.mubr.bf16.gmra.mrb[8].mxu0 %v809_v47  ;;  %v718_v47 = vld [vmem:[%s2957_s24 + $0x148] sm:$0xff] }
 0x175   : > { %931 = vmatprep.mubr.bf16.mxu0 %v812_v6  ;;  %v720_v6 = vld [vmem:[%s2957_s24 + $0x158] sm:$0xff]  ;;  %v782_v10 = vmul.f32 0.0625, %v718_v47 }
 0x176   : > { %v784_v11 = vmul.f32 0.0625, %v720_v6 }
 0x178   : > { %v826_v57 = vpack.c.bf16 %v784_v11, %v782_v10 }
 0x17c   : > { %932 = vmatmul.mubr.bf16.gmra.mrb[12].mxu0 %v811_v15  ;;  %v722_v15 = vld [vmem:[%s2957_s24 + $0x168] sm:$0xff] }
 0x17d   : > { %941 = vmatprep.mubr.bf16.mxu0 %v814_v16  ;;  %v724_v16 = vld [vmem:[%s2957_s24 + $0x178] sm:$0xff]  ;;  %v786_v17 = vmul.f32 0.0625, %v722_v15 }
 0x17e   : > { %v788_v18 = vmul.f32 0.0625, %v724_v16 }
 0x180   : > { %v828_v21 = vpack.c.bf16 %v788_v18, %v786_v17 }
 0x184   : > { %942 = vmatmul.mubr.bf16.gmra.mrb[16].mxu0 %v813_v22  ;;  %v726_v22 = vld [vmem:[%s2957_s24 + $0x188] sm:$0xff] }
 0x185   : > { %951 = vmatprep.mubr.bf16.mxu0 %v816_v24  ;;  %v728_v24 = vld [vmem:[%s2957_s24 + $0x198] sm:$0xff]  ;;  %v790_v25 = vmul.f32 0.0625, %v726_v22 }
 0x186   : > { %v792_v26 = vmul.f32 0.0625, %v728_v24 }
 0x188   : > { %v830_v28 = vpack.c.bf16 %v792_v26, %v790_v25 }
 0x18c   : > { %952 = vmatmul.mubr.bf16.gmra.mrb[20].mxu0 %v815_v31  ;;  %v730_v31 = vld [vmem:[%s2957_s24 + $0x1a8] sm:$0xff] }
 0x18d   : > { %961 = vmatprep.mubr.bf16.mxu0 %v818_v32  ;;  %v732_v32 = vld [vmem:[%s2957_s24 + $0x1b8] sm:$0xff]  ;;  %v794_v35 = vmul.f32 0.0625, %v730_v31 }
 0x18e   : > { %v796_v36 = vmul.f32 0.0625, %v732_v32 }
 0x190   : > { %v832_v38 = vpack.c.bf16 %v796_v36, %v794_v35 }
 0x194   : > { %962 = vmatmul.mubr.bf16.gmra.mrb[24].mxu0 %v817_v41  ;;  %v734_v41 = vld [vmem:[%s2957_s24 + $0x1c8] sm:$0xff] }
 0x195   : > { %971 = vmatprep.mubr.bf16.mxu0 %v820_v42  ;;  %v736_v42 = vld [vmem:[%s2957_s24 + $0x1d8] sm:$0xff]  ;;  %v798_v46 = vmul.f32 0.0625, %v734_v41 }
 0x196   : > { %v800_v48 = vmul.f32 0.0625, %v736_v42 }
 0x198   : > { %v834_v50 = vpack.c.bf16 %v800_v48, %v798_v46 }
 0x19c   : > { %972 = vmatmul.mubr.bf16.gmra.mrb[28].mxu0 %v819_v54  ;;  %v738_v54 = vld [vmem:[%s2957_s24 + $0x1e8] sm:$0xff] }
 0x19d   : > { %981 = vmatprep.mubr.bf16.mxu0 %v822_v55  ;;  %v740_v55 = vld [vmem:[%s2957_s24 + $0x1f8] sm:$0xff]  ;;  %v802_v59 = vmul.f32 0.0625, %v738_v54 }
 0x19e   : > { %v804_v60 = vmul.f32 0.0625, %v740_v55 }
 0x1a0   : > { %v836_v62 = vpack.c.bf16 %v804_v60, %v802_v59 }
 0x1a4   : > { %982 = vmatmul.mubr.bf16.gmra.mrb[32].mxu0 %v821_v2  ;;  %v801_v2 = vmul.f32 0.0625, %v737_v0 }
 0x1a5   : > { %991 = vmatprep.mubr.bf16.mxu0 %v824_v4  ;;  %v803_v4 = vmul.f32 0.0625, %v739_v1 }
 0x1a7   : > { %v835_v5 = vpack.c.bf16 %v803_v4, %v801_v2 }
 0x1ac   : > { %992 = vmatmul.mubr.bf16.gmra.mrb[36].mxu0 %v823_v53 }
 0x1ad   : > { %1001 = vmatprep.mubr.bf16.mxu0 %v826_v57 }
 0x1b4   : > { %1002 = vmatmul.mubr.bf16.gmra.mrb[40].mxu0 %v825_v20 }
 0x1b5   : > { %1011 = vmatprep.mubr.bf16.mxu0 %v828_v21 }
 0x1bc   : > { %1012 = vmatmul.mubr.bf16.gmra.mrb[44].mxu0 %v827_v27 }
 0x1bd   : > { %1021 = vmatprep.mubr.bf16.mxu0 %v830_v28 }
 0x1c4   : > { %1022 = vmatmul.mubr.bf16.gmra.mrb[48].mxu0 %v829_v37 }
 0x1c5   : > { %1031 = vmatprep.mubr.bf16.mxu0 %v832_v38 }
 0x1cc   : > { %1032 = vmatmul.mubr.bf16.gmra.mrb[52].mxu0 %v831_v49 }
 0x1cd   : > { %1041 = vmatprep.mubr.bf16.mxu0 %v834_v50 }
 0x1d4   : > { %1042 = vmatmul.mubr.bf16.gmra.mrb[56].mxu0 %v833_v61 }
 0x1d5   : > { %1051 = vmatprep.mubr.bf16.mxu0 %v836_v62 }
 0x1dc   : > { %1052 = vmatmul.mubr.bf16.gmra.mrb[60].mxu0 %v835_v5 }
 0x237   : > { %v3163_v43 = vpop.f32.mrb[0].mxu0 }
 0x238   : > { %v3165_v47 = vpop.f32.mrb[1].mxu0 }
 0x239   : > { %v3167_v6 = vpop.f32.mrb[2].mxu0  ;;  %v1062_v7 = vmax.f32 %v3163_v43, %v3165_v47 }
 0x23a   : > { %v3171_v8 = vpop.f32.mrb[3].mxu0 }
 0x23b   : > { %1063 = vmax.xlane.f32.xlu0 %v1062_v7  ;;  %v1065_v10 = vmax.f32 %v3167_v6, %v3171_v8 }
 0x23d   : > { %1066 = vmax.xlane.f32.xlu1 %v1065_v10 }
 0x23f   : > { %v3175_v11 = vpop.f32.mrb[4].mxu0 }
 0x240   : > { %v3177_v53 = vpop.f32.mrb[5].mxu0 }
 0x241   : > { %v3179_v57 = vpop.f32.mrb[6].mxu0  ;;  %v1068_v12 = vmax.f32 %v3175_v11, %v3177_v53 }
 0x242   : > { %v3183_v14 = vpop.f32.mrb[7].mxu0 }
 0x243   : > { %1069 = vmax.xlane.f32.xlu1 %v1068_v12  ;;  %v1071_v15 = vmax.f32 %v3179_v57, %v3183_v14 }
 0x247   : > { %1072 = vmax.xlane.f32.xlu1 %v1071_v15  ;;  %v3187_v16 = vpop.f32.mrb[8].mxu0 }
 0x248   : > { %v3189_v63 = vpop.f32.mrb[9].mxu0 }
 0x249   : > { %v3191_v3 = vpop.f32.mrb[10].mxu0  ;;  %v1074_v17 = vmax.f32 %v3187_v16, %v3189_v63 }
 0x24a   : > { %v3195_v18 = vpop.f32.mrb[11].mxu0 }
 0x24b   : > { %1075 = vmax.xlane.f32.xlu0 %v1074_v17  ;;  %v1077_v20 = vmax.f32 %v3191_v3, %v3195_v18 }
 0x24d   : > { %1078 = vmax.xlane.f32.xlu1 %v1077_v20 }
 0x24f   : > { %v3199_v21 = vpop.f32.mrb[12].mxu0 }
 0x250   : > { %v3201_v9 = vpop.f32.mrb[13].mxu0 }
 0x251   : > { %v3203_v13 = vpop.f32.mrb[14].mxu0  ;;  %v1080_v22 = vmax.f32 %v3199_v21, %v3201_v9 }
 0x252   : > { %v3207_v24 = vpop.f32.mrb[15].mxu0 }
 0x253   : > { %1081 = vmax.xlane.f32.xlu0 %v1080_v22  ;;  %v1083_v19 = vmax.f32 %v3203_v13, %v3207_v24 }
 0x255   : > { %1084 = vmax.xlane.f32.xlu1 %v1083_v19 }
 0x257   : > { %v3211_v23 = vpop.f32.mrb[16].mxu0 }
 0x258   : > { %v3213_v25 = vpop.f32.mrb[17].mxu0 }
 0x259   : > { %v3215_v26 = vpop.f32.mrb[18].mxu0  ;;  %v1086_v27 = vmax.f32 %v3211_v23, %v3213_v25 }
 0x25a   : > { %v3219_v28 = vpop.f32.mrb[19].mxu0 }
 0x25b   : > { %1087 = vmax.xlane.f32.xlu0 %v1086_v27  ;;  %v1089_v29 = vmax.f32 %v3215_v26, %v3219_v28 }
 0x25d   : > { %1090 = vmax.xlane.f32.xlu1 %v1089_v29 }
 0x25f   : > { %v3223_v30 = vpop.f32.mrb[20].mxu0 }
 0x260   : > { %v3225_v31 = vpop.f32.mrb[21].mxu0 }
 0x261   : > { %v3227_v32 = vpop.f32.mrb[22].mxu0  ;;  %v1092_v33 = vmax.f32 %v3223_v30, %v3225_v31 }
 0x262   : > { %v3231_v34 = vpop.f32.mrb[23].mxu0 }
 0x263   : > { %1093 = vmax.xlane.f32.xlu0 %v1092_v33  ;;  %v1095_v35 = vmax.f32 %v3227_v32, %v3231_v34 }
 0x265   : > { %1096 = vmax.xlane.f32.xlu1 %v1095_v35  ;;  %v550_v35 = vld [vmem:[%s3356_s20 + $0x8] sm:$0xff] }
 0x267   : > { %v3235_v36 = vpop.f32.mrb[24].mxu0 }
 0x268   : > { %v3237_v37 = vpop.f32.mrb[25].mxu0 }
 0x269   : > { %v3239_v38 = vpop.f32.mrb[26].mxu0  ;;  %v1098_v39 = vmax.f32 %v3235_v36, %v3237_v37 }
 0x26a   : > { %v3243_v40 = vpop.f32.mrb[27].mxu0 }
 0x26b   : > { %1099 = vmax.xlane.f32.xlu0 %v1098_v39  ;;  %v1101_v41 = vmax.f32 %v3239_v38, %v3243_v40 }
 0x26d   : > { %1102 = vmax.xlane.f32.xlu1 %v1101_v41 }
 0x26f   : > { %v3247_v42 = vpop.f32.mrb[28].mxu0 }
 0x270   : > { %v3249_v44 = vpop.f32.mrb[29].mxu0 }
 0x271   : > { %3955 = vst [vmem:[#allocation19_spill] sm:$0xff] %v3249_v44  ;;  %v3251_v45 = vpop.f32.mrb[30].mxu0  ;;  %v1104_v46 = vmax.f32 %v3247_v42, %v3249_v44  ;;  %v578_v44 = vld [vmem:[%s3356_s20 + $0xe8] sm:$0xff] }
 0x272   : > { %3956 = vst [vmem:[#allocation20_spill] sm:$0xff] %v3251_v45  ;;  %v3255_v48 = vpop.f32.mrb[31].mxu0 }
 0x273   : > { %3957 = vst [vmem:[#allocation21_spill] sm:$0xff] %v3255_v48  ;;  %1105 = vmax.xlane.f32.xlu0 %v1104_v46  ;;  %v1107_v49 = vmax.f32 %v3251_v45, %v3255_v48  ;;  %v570_v48 = vld [vmem:[%s3356_s20 + $0xa8] sm:$0xff]  ;;  %v572_v45 = vld [vmem:[%s3356_s20 + $0xb8] sm:$0xff] }
 0x275   : > { %1108 = vmax.xlane.f32.xlu1 %v1107_v49 }
 0x277   : > { %v3259_v50 = vpop.f32.mrb[32].mxu0 }
 0x278   : > { %3958 = vst [vmem:[#allocation22_spill] sm:$0xff] %v3259_v50  ;;  %v3261_v51 = vpop.f32.mrb[33].mxu0 }
 0x279   : > { %3959 = vst [vmem:[#allocation23_spill] sm:$0xff] %v3261_v51  ;;  %v3263_v52 = vpop.f32.mrb[34].mxu0  ;;  %v1110_v54 = vmax.f32 %v3259_v50, %v3261_v51  ;;  %v559_v51 = vld [vmem:[%s3356_s20 + $0x50] sm:$0xff]  ;;  %v562_v50 = vld [vmem:[%s3356_s20 + $0x68] sm:$0xff] }
 0x27a   : > { %3960 = vst [vmem:[#allocation24_spill] sm:$0xff] %v3263_v52  ;;  %v3267_v55 = vpop.f32.mrb[35].mxu0 }
 0x27b   : > { %3961 = vst [vmem:[#allocation25_spill] sm:$0xff] %v3267_v55  ;;  %1111 = vmax.xlane.f32.xlu0 %v1110_v54  ;;  %v1113_v56 = vmax.f32 %v3263_v52, %v3267_v55  ;;  %v560_v55 = vld [vmem:[%s3356_s20 + $0x58] sm:$0xff] }
 0x27d   : > { %1114 = vmax.xlane.f32.xlu1 %v1113_v56 }
 0x27f   : > { %v3271_v58 = vpop.f32.mrb[36].mxu0 }
 0x280   : > { %3962 = vst [vmem:[#allocation26_spill] sm:$0xff] %v3271_v58  ;;  %v3273_v59 = vpop.f32.mrb[37].mxu0 }
 0x281   : > { %3963 = vst [vmem:[#allocation27_spill] sm:$0xff] %v3273_v59  ;;  %v3275_v60 = vpop.f32.mrb[38].mxu0  ;;  %v1116_v61 = vmax.f32 %v3271_v58, %v3273_v59  ;;  %v555_v59 = vld [vmem:[%s3356_s20 + $0x30] sm:$0xff]  ;;  %v558_v58 = vld [vmem:[%s3356_s20 + $0x48] sm:$0xff] }
 0x282   : > { %3964 = vst [vmem:[#allocation28_spill] sm:$0xff] %v3275_v60  ;;  %v3279_v62 = vpop.f32.mrb[39].mxu0 }
 0x283   : > { %3965 = vst [vmem:[#allocation29_spill] sm:$0xff] %v3279_v62  ;;  %1117 = vmax.xlane.f32.xlu0 %v1116_v61  ;;  %v1119_v0 = vmax.f32 %v3275_v60, %v3279_v62  ;;  %v553_v60 = vld [vmem:[%s3356_s20 + $0x20] sm:$0xff] }
 0x284   : > { %v615_v52 = vpack.c.bf16 %v555_v59, %v553_v60  ;;  %v568_v59 = vld [vmem:[%s3356_s20 + $0x98] sm:$0xff]  ;;  %v565_v60 = vld [vmem:[%s3356_s20 + $0x80] sm:$0xff] }
 0x285   : > { %1120 = vmax.xlane.f32.xlu1 %v1119_v0  ;;  %v549_v0 = vld [vmem:[%s3356_s20] sm:$0xff] }
 0x287   : > { %v3283_v1 = vpop.f32.mrb[40].mxu0 }
 0x288   : > { %3966 = vst [vmem:[#allocation30_spill] sm:$0xff] %v3283_v1  ;;  %v3285_v2 = vpop.f32.mrb[41].mxu0 }
 0x289   : > { %3967 = vst [vmem:[#allocation31_spill] sm:$0xff] %v3285_v2  ;;  %v3287_v4 = vpop.f32.mrb[42].mxu0  ;;  %v1122_v5 = vmax.f32 %v3283_v1, %v3285_v2  ;;  %v556_v2 = vld [vmem:[%s3356_s20 + $0x38] sm:$0xff] }
 0x28a   : > { %3968 = vst [vmem:[#allocation32_spill] sm:$0xff] %v3287_v4  ;;  %v3291_v7 = vpop.f32.mrb[43].mxu0 }
 0x28b   : > { %3969 = vst [vmem:[#allocation33_spill] sm:$0xff] %v3291_v7  ;;  %1123 = vmax.xlane.f32.xlu0 %v1122_v5  ;;  %v1125_v10 = vmax.f32 %v3287_v4, %v3291_v7  ;;  %v551_v4 = vld [vmem:[%s3356_s20 + $0x10] sm:$0xff] }
 0x28c   : > { %v613_v1 = vpack.c.bf16 %v551_v4, %v549_v0  ;;  %v563_v0 = vld [vmem:[%s3356_s20 + $0x70] sm:$0xff] }
 0x28d   : > { %1126 = vmax.xlane.f32.xlu1 %v1125_v10 }
 0x28f   : > { %v3295_v12 = vpop.f32.mrb[44].mxu0 }
 0x290   : > { %3970 = vst [vmem:[#allocation34_spill] sm:$0xff] %v3295_v12  ;;  %v3297_v15 = vpop.f32.mrb[45].mxu0 }
 0x291   : > { %3971 = vst [vmem:[#allocation35_spill] sm:$0xff] %v3297_v15  ;;  %v3299_v17 = vpop.f32.mrb[46].mxu0  ;;  %v1128_v20 = vmax.f32 %v3295_v12, %v3297_v15  ;;  %v554_v12 = vld [vmem:[%s3356_s20 + $0x28] sm:$0xff] }
 0x292   : > { %3972 = vst [vmem:[#allocation36_spill] sm:$0xff] %v3299_v17  ;;  %v3303_v22 = vpop.f32.mrb[47].mxu0  ;;  %v616_v62 = vpack.c.bf16 %v556_v2, %v554_v12  ;;  %v564_v2 = vld [vmem:[%s3356_s20 + $0x78] sm:$0xff]  ;;  %v561_v12 = vld [vmem:[%s3356_s20 + $0x60] sm:$0xff] }
 0x293   : > { %3973 = vst [vmem:[#allocation37_spill] sm:$0xff] %v3303_v22  ;;  %1129 = vmax.xlane.f32.xlu0 %v1128_v20  ;;  %v1131_v19 = vmax.f32 %v3299_v17, %v3303_v22 }
 0x295   : > { %1132 = vmax.xlane.f32.xlu1 %v1131_v19  ;;  %v552_v19 = vld [vmem:[%s3356_s20 + $0x18] sm:$0xff] }
 0x296   : > { %v614_v7 = vpack.c.bf16 %v552_v19, %v550_v35  ;;  %v618_v35 = vpack.c.bf16 %v560_v55, %v558_v58  ;;  %v557_v19 = vld [vmem:[%s3356_s20 + $0x40] sm:$0xff]  ;;  %v619_v55 = vpack.c.bf16 %v563_v0, %v561_v12 }
 0x297   : > { %v3307_v27 = vpop.f32.mrb[48].mxu0  ;;  %v617_v4 = vpack.c.bf16 %v559_v51, %v557_v19  ;;  %v574_v19 = vld [vmem:[%s3356_s20 + $0xc8] sm:$0xff] }
 0x298   : > { %v3309_v29 = vpop.f32.mrb[49].mxu0  ;;  %1606 = vmatprep.subr.bf16.mxu1 %v614_v7  ;;  %v620_v7 = vpack.c.bf16 %v564_v2, %v562_v50  ;;  %v624_v50 = vpack.c.bf16 %v572_v45, %v570_v48  ;;  %v576_v2 = vld [vmem:[%s3356_s20 + $0xd8] sm:$0xff] }
 0x299   : > { %v3311_v33 = vpop.f32.mrb[50].mxu0  ;;  %1607 = vmatpush1.bf16.msra.mxu1 %v613_v1  ;;  %v566_v1 = vld [vmem:[%s3356_s20 + $0x88] sm:$0xff] }
 0x29a   : > { %v3315_v39 = vpop.f32.mrb[51].mxu0  ;;  %1608 = vmatprep.subr.bf16.mxu1 %v616_v62  ;;  %v622_v58 = vpack.c.bf16 %v568_v59, %v566_v1  ;;  %v567_v62 = vld [vmem:[%s3356_s20 + $0x90] sm:$0xff]  ;;  %v626_v59 = vpack.c.bf16 %v576_v2, %v574_v19  ;;  %v582_v19 = vld [vmem:[%s3356_s20 + $0x108] sm:$0xff]  ;;  %v584_v2 = vld [vmem:[%s3356_s20 + $0x118] sm:$0xff] }
 0x29b   : > { %v621_v51 = vpack.c.bf16 %v567_v62, %v565_v60  ;;  %v575_v62 = vld [vmem:[%s3356_s20 + $0xd0] sm:$0xff] }
 0x29d   : > { %1609 = vmatpush1.bf16.msra.mxu1 %v615_v52  ;;  %v569_v52 = vld [vmem:[%s3356_s20 + $0xa0] sm:$0xff] }
 0x29e   : > { %1610 = vmatprep.subr.bf16.mxu1 %v618_v35  ;;  %v571_v35 = vld [vmem:[%s3356_s20 + $0xb0] sm:$0xff] }
 0x29f   : > { %v3319_v46 = vpop.f32.mrb[52].mxu0  ;;  %v623_v1 = vpack.c.bf16 %v571_v35, %v569_v52  ;;  %v579_v35 = vld [vmem:[%s3356_s20 + $0xf0] sm:$0xff] }
 0x2a0   : > { %v3321_v49 = vpop.f32.mrb[53].mxu0 }
 0x2a1   : > { %v3323_v54 = vpop.f32.mrb[54].mxu0  ;;  %1611 = vmatpush1.bf16.msra.mxu1 %v617_v4 }
 0x2a2   : > { %v3327_v61 = vpop.f32.mrb[55].mxu0  ;;  %1612 = vmatprep.subr.bf16.mxu1 %v620_v7 }
 0x2a5   : > { %1613 = vmatpush1.bf16.msra.mxu1 %v619_v55 }
 0x2a6   : > { %1614 = vmatprep.subr.bf16.mxu1 %v622_v58  ;;  %v573_v58 = vld [vmem:[%s3356_s20 + $0xc0] sm:$0xff] }
 0x2a7   : > { %v3331_v5 = vpop.f32.mrb[56].mxu0  ;;  %v625_v52 = vpack.c.bf16 %v575_v62, %v573_v58  ;;  %v585_v62 = vld [vmem:[%s3356_s20 + $0x120] sm:$0xff] }
 0x2a8   : > { %v3333_v10 = vpop.f32.mrb[57].mxu0 }
 0x2a9   : > { %v3335_v20 = vpop.f32.mrb[58].mxu0  ;;  %1615 = vmatpush1.bf16.msra.mxu1 %v621_v51 }
 0x2aa   : > { %v3339_v41 = vpop.f32.mrb[59].mxu0  ;;  %1616 = vmatprep.subr.bf16.mxu1 %v624_v50 }
 0x2ad   : > { %1617 = vmatpush1.bf16.msra.mxu1 %v623_v1 }
 0x2ae   : > { %1618 = vmatprep.subr.bf16.mxu1 %v626_v59  ;;  %v581_v59 = vld [vmem:[%s3356_s20 + $0x100] sm:$0xff] }
 0x2af   : > { %v3343_v56 = vpop.f32.mrb[60].mxu0 }
 0x2b0   : > { %v3345_v22 = vpop.f32.mrb[61].mxu0 }
 0x2b1   : > { %v3347_v17 = vpop.f32.mrb[62].mxu0  ;;  %1619 = vmatpush1.bf16.msra.mxu1 %v625_v52 }
 0x2b2   : > { %v3351_v15 = vpop.f32.mrb[63].mxu0 }
 0x2c8   : > { %v1064_v4 = vpop.xlane.xlu0 %1063 }
 0x2c9   : > { %v1158_v7 = vsub.f32 %v3163_v43, %v1064_v4  ;;  %v1159_v12 = vsub.f32 %v3165_v47, %v1064_v4  ;;  %v580_v43 = vld [vmem:[%s3356_s20 + $0xf8] sm:$0xff] }
 0x2ca   : > { %v1067_v0 = vpop.xlane.xlu1 %1066 }
 0x2cb   : > { %v1222_v55 = vmul.f32 1.442695, %v1158_v7  ;;  %v1224_v60 = vmul.f32 1.442695, %v1159_v12  ;;  %v1160_v45 = vsub.f32 %v3167_v6, %v1067_v0  ;;  %v1161_v48 = vsub.f32 %v3171_v8, %v1067_v0  ;;  %v577_v8 = vld [vmem:[%s3356_s20 + $0xe0] sm:$0xff] }
 0x2cc   : > { %v628_v6 = vpack.c.bf16 %v580_v43, %v578_v44  ;;  %v627_v12 = vpack.c.bf16 %v579_v35, %v577_v8  ;;  %v630_v44 = vpack.c.bf16 %v584_v2, %v582_v19  ;;  %v587_v43 = vld [vmem:[%s3356_s20 + $0x130] sm:$0xff]  ;;  %v590_v8 = vld [vmem:[%s3356_s20 + $0x148] sm:$0xff]  ;;  %v592_v35 = vld [vmem:[%s3356_s20 + $0x158] sm:$0xff] }
 0x2cd   : > { %2337 = vpow2.f32 %v1222_v55  ;;  %v1226_v47 = vmul.f32 1.442695, %v1160_v45  ;;  %v1228_v51 = vmul.f32 1.442695, %v1161_v48  ;;  %v583_v55 = vld [vmem:[%s3356_s20 + $0x110] sm:$0xff]  ;;  %v586_v45 = vld [vmem:[%s3356_s20 + $0x128] sm:$0xff] }
 0x2ce   : > { %2339 = vpow2.f32 %v1224_v60  ;;  %1620 = vmatprep.subr.bf16.mxu1 %v628_v6  ;;  %v588_v48 = vld [vmem:[%s3356_s20 + $0x138] sm:$0xff]  ;;  %v629_v58 = vpack.c.bf16 %v583_v55, %v581_v59 }
 0x2cf   : > { %2341 = vpow2.f32 %v1226_v47  ;;  %1621 = vmatpush1.bf16.msra.mxu1 %v627_v12  ;;  %v632_v6 = vpack.c.bf16 %v588_v48, %v586_v45  ;;  %v594_v48 = vld [vmem:[%s3356_s20 + $0x168] sm:$0xff] }
 0x2d0   : > { %2343 = vpow2.f32 %v1228_v51  ;;  %v1070_v50 = vpop.xlane.xlu1 %1069  ;;  %1622 = vmatprep.subr.bf16.mxu1 %v630_v44 }
 0x2d1   : > { %v1162_v4 = vsub.f32 %v3175_v11, %v1070_v50  ;;  %v1163_v7 = vsub.f32 %v3177_v53, %v1070_v50 }
 0x2d3   : > { %v1230_v0 = vmul.f32 1.442695, %v1162_v4  ;;  %v1232_v1 = vmul.f32 1.442695, %v1163_v7  ;;  %1623 = vmatpush1.bf16.msra.mxu1 %v629_v58 }
 0x2d4   : > { %v1073_v60 = vpop.xlane.xlu1 %1072  ;;  %1624 = vmatprep.subr.bf16.mxu1 %v632_v6 }
 0x2d5   : > { %2345 = vpow2.f32 %v1230_v0  ;;  %v1164_v11 = vsub.f32 %v3179_v57, %v1073_v60  ;;  %v1165_v53 = vsub.f32 %v3183_v14, %v1073_v60  ;;  %v631_v0 = vpack.c.bf16 %v587_v43, %v585_v62  ;;  %v591_v60 = vld [vmem:[%s3356_s20 + $0x150] sm:$0xff] }
 0x2d6   : > { %2347 = vpow2.f32 %v1232_v1  ;;  %v634_v1 = vpack.c.bf16 %v592_v35, %v590_v8 }
 0x2d7   : > { %v3406_v47 = vpop.eup %2337  ;;  %v1234_v51 = vmul.f32 1.442695, %v1164_v11  ;;  %v1236_v52 = vmul.f32 1.442695, %v1165_v53  ;;  %v596_v11 = vld [vmem:[%s3356_s20 + $0x178] sm:$0xff]  ;;  %1625 = vmatpush1.bf16.msra.mxu1 %v631_v0 }
 0x2d8   : > { %v3410_v50 = vpop.eup %2339  ;;  %v1076_v19 = vpop.xlane.xlu0 %1075  ;;  %1626 = vmatprep.subr.bf16.mxu1 %v634_v1  ;;  %v636_v43 = vpack.c.bf16 %v596_v11, %v594_v48 }
 0x2d9   : > { %v3412_v2 = vpop.eup %2341  ;;  %2349 = vpow2.f32 %v1234_v51  ;;  %v1166_v57 = vsub.f32 %v3187_v16, %v1076_v19  ;;  %v1167_v14 = vsub.f32 %v3189_v63, %v1076_v19  ;;  %v1350_v4 = vadd.f32 %v3410_v50, %v3406_v47  ;;  %v589_v63 = vld [vmem:[%s3356_s20 + $0x140] sm:$0xff] }
 0x2da   : > { %v3418_v7 = vpop.eup %2343  ;;  %2351 = vpow2.f32 %v1236_v52  ;;  %v1079_v12 = vpop.xlane.xlu1 %1078  ;;  %v593_v51 = vld [vmem:[%s3356_s20 + $0x160] sm:$0xff]  ;;  %v595_v52 = vld [vmem:[%s3356_s20 + $0x170] sm:$0xff] }
 0x2db   : > { %v1238_v44 = vmul.f32 1.442695, %v1166_v57  ;;  %v1240_v59 = vmul.f32 1.442695, %v1167_v14  ;;  %v1168_v55 = vsub.f32 %v3191_v3, %v1079_v12  ;;  %v1169_v16 = vsub.f32 %v3195_v18, %v1079_v12  ;;  %1351 = vadd.xlane.f32.xlu0 %v1350_v4 }
 0x2dc   : > { %v1353_v45 = vadd.f32 %v3418_v7, %v3412_v2  ;;  %v633_v3 = vpack.c.bf16 %v591_v60, %v589_v63  ;;  %v3974_v18 = vmax.f32 %v3307_v27, %v3309_v29  ;;  %v3975_v14 = vmax.f32 %v3311_v33, %v3315_v39 }
 0x2dd   : > { %2353 = vpow2.f32 %v1238_v44  ;;  %v1242_v53 = vmul.f32 1.442695, %v1168_v55  ;;  %v1244_v58 = vmul.f32 1.442695, %v1169_v16  ;;  %v635_v12 = vpack.c.bf16 %v595_v52, %v593_v51 }
 0x2de   : > { %2355 = vpow2.f32 %v1240_v59  ;;  %1354 = vadd.xlane.f32.xlu1 %v1353_v45  ;;  %1627 = vmatpush1.bf16.msra.mxu1 %v633_v3  ;;  %v598_v3 = vld [vmem:[%s3356_s20 + $0x188] sm:$0xff] }
 0x2df   : > { %v3428_v62 = vpop.eup %2345  ;;  %2357 = vpow2.f32 %v1242_v53  ;;  %1135 = vmax.xlane.f32.xlu0 %v3974_v18  ;;  %1628 = vmatprep.subr.bf16.mxu1 %v636_v43  ;;  %v600_v18 = vld [vmem:[%s3356_s20 + $0x198] sm:$0xff] }
 0x2e0   : > { %v3435_v6 = vpop.eup %2347  ;;  %2359 = vpow2.f32 %v1244_v58  ;;  %v1082_v8 = vpop.xlane.xlu0 %1081  ;;  %v638_v52 = vpack.c.bf16 %v600_v18, %v598_v3 }
 0x2e1   : > { %v1170_v35 = vsub.f32 %v3199_v21, %v1082_v8  ;;  %v1171_v19 = vsub.f32 %v3201_v9, %v1082_v8  ;;  %v1356_v57 = vadd.f32 %v3435_v6, %v3428_v62  ;;  %v597_v8 = vld [vmem:[%s3356_s20 + $0x180] sm:$0xff] }
 0x2e2   : > { %1138 = vmax.xlane.f32.xlu1 %v3975_v14  ;;  %v1085_v4 = vpop.xlane.xlu1 %1084  ;;  %1629 = vmatpush1.bf16.msra.mxu1 %v635_v12 }
 0x2e3   : > { %v3444_v0 = vpop.eup %2349  ;;  %v1246_v1 = vmul.f32 1.442695, %v1170_v35  ;;  %v1248_v44 = vmul.f32 1.442695, %v1171_v19  ;;  %v1172_v59 = vsub.f32 %v3203_v13, %v1085_v4  ;;  %v1173_v21 = vsub.f32 %v3207_v24, %v1085_v4  ;;  %1357 = vadd.xlane.f32.xlu0 %v1356_v57  ;;  %v599_v35 = vld [vmem:[%s3356_s20 + $0x190] sm:$0xff]  ;;  %1630 = vmatprep.subr.bf16.mxu1 %v638_v52 }
 0x2e4   : > { %v3448_v9 = vpop.eup %2351  ;;  %v3976_v13 = vmax.f32 %v3319_v46, %v3321_v49  ;;  %v637_v4 = vpack.c.bf16 %v599_v35, %v597_v8  ;;  %v606_v8 = vld [vmem:[%s3356_s20 + $0x1c8] sm:$0xff]  ;;  %v608_v35 = vld [vmem:[%s3356_s20 + $0x1d8] sm:$0xff] }
 0x2e5   : > { %2361 = vpow2.f32 %v1246_v1  ;;  %v1250_v55 = vmul.f32 1.442695, %v1172_v59  ;;  %v1252_v16 = vmul.f32 1.442695, %v1173_v21  ;;  %v1359_v63 = vadd.f32 %v3448_v9, %v3444_v0  ;;  %v604_v59 = vld [vmem:[%s3356_s20 + $0x1b8] sm:$0xff] }
 0x2e6   : > { %2363 = vpow2.f32 %v1248_v44  ;;  %1631 = vmatpush1.bf16.msra.mxu1 %v637_v4  ;;  %v3978_v21 = vmax.f32 %v3331_v5, %v3333_v10  ;;  %v642_v4 = vpack.c.bf16 %v608_v35, %v606_v8 }
 0x2e7   : > { %v3452_v60 = vpop.eup %2353  ;;  %2365 = vpow2.f32 %v1250_v55  ;;  %1360 = vadd.xlane.f32.xlu1 %v1359_v63  ;;  %1141 = vmax.xlane.f32.xlu0 %v3976_v13  ;;  %v603_v63 = vld [vmem:[%s3356_s20 + $0x1b0] sm:$0xff] }
 0x2e8   : > { %v3457_v24 = vpop.eup %2355  ;;  %2367 = vpow2.f32 %v1252_v16  ;;  %v1088_v45 = vpop.xlane.xlu0 %1087  ;;  %v601_v16 = vld [vmem:[%s3356_s20 + $0x1a0] sm:$0xff] }
 0x2e9   : > { %v3459_v48 = vpop.eup %2357  ;;  %v1174_v11 = vsub.f32 %v3211_v23, %v1088_v45  ;;  %v1175_v53 = vsub.f32 %v3213_v25, %v1088_v45  ;;  %v1362_v58 = vadd.f32 %v3457_v24, %v3452_v60  ;;  %v3977_v25 = vmax.f32 %v3323_v54, %v3327_v61 }
 0x2ea   : > { %v3467_v43 = vpop.eup %2359  ;;  %v1091_v51 = vpop.xlane.xlu1 %1090 }
 0x2eb   : > { %v1254_v19 = vmul.f32 1.442695, %v1174_v11  ;;  %v1256_v57 = vmul.f32 1.442695, %v1175_v53  ;;  %v1176_v14 = vsub.f32 %v3215_v26, %v1091_v51  ;;  %v1177_v23 = vsub.f32 %v3219_v28, %v1091_v51  ;;  %1363 = vadd.xlane.f32.xlu0 %v1362_v58  ;;  %1144 = vmax.xlane.f32.xlu1 %v3977_v25  ;;  %v602_v26 = vld [vmem:[%s3356_s20 + $0x1a8] sm:$0xff]  ;;  %v607_v25 = vld [vmem:[%s3356_s20 + $0x1d0] sm:$0xff] }
 0x2ec   : > { %v1365_v44 = vadd.f32 %v3467_v43, %v3459_v48  ;;  %v640_v55 = vpack.c.bf16 %v604_v59, %v602_v26  ;;  %v639_v11 = vpack.c.bf16 %v603_v63, %v601_v16  ;;  %v609_v16 = vld [vmem:[%s3356_s20 + $0x1e0] sm:$0xff]  ;;  %v611_v63 = vld [vmem:[%s3356_s20 + $0x1f0] sm:$0xff] }
 0x2ed   : > { %2369 = vpow2.f32 %v1254_v19  ;;  %v1258_v12 = vmul.f32 1.442695, %v1176_v14  ;;  %v1260_v1 = vmul.f32 1.442695, %v1177_v23  ;;  %v605_v23 = vld [vmem:[%s3356_s20 + $0x1c0] sm:$0xff] }
 0x2ee   : > { %2371 = vpow2.f32 %v1256_v57  ;;  %1632 = vmatprep.subr.bf16.mxu1 %v640_v55 }
 0x2ef   : > { %v3480_v28 = vpop.eup %2361  ;;  %2373 = vpow2.f32 %v1258_v12  ;;  %1366 = vadd.xlane.f32.xlu1 %v1365_v44  ;;  %1147 = vmax.xlane.f32.xlu0 %v3978_v21  ;;  %v641_v12 = vpack.c.bf16 %v607_v25, %v605_v23  ;;  %v3980_v21 = vmax.f32 %v3343_v56, %v3345_v22  ;;  %v3981_v23 = vmax.f32 %v3347_v17, %v3351_v15 }
 0x2f0   : > { %v3487_v13 = vpop.eup %2363  ;;  %2375 = vpow2.f32 %v1260_v1  ;;  %v1094_v45 = vpop.xlane.xlu0 %1093  ;;  %1633 = vmatpush1.bf16.msra.mxu1 %v639_v11 }
 0x2f1   : > { %v3489_v53 = vpop.eup %2365  ;;  %v1178_v58 = vsub.f32 %v3223_v30, %v1094_v45  ;;  %v1179_v3 = vsub.f32 %v3225_v31, %v1094_v45  ;;  %v1368_v18 = vadd.f32 %v3487_v13, %v3480_v28  ;;  %v3979_v31 = vmax.f32 %v3335_v20, %v3339_v41  ;;  %1634 = vmatprep.subr.bf16.mxu1 %v642_v4 }
 0x2f2   : > { %v3495_v51 = vpop.eup %2367  ;;  %v1097_v52 = vpop.xlane.xlu1 %1096 }
 0x2f3   : > { %v1262_v19 = vmul.f32 1.442695, %v1178_v58  ;;  %v1264_v57 = vmul.f32 1.442695, %v1179_v3  ;;  %v1180_v14 = vsub.f32 %v3227_v32, %v1097_v52  ;;  %v1181_v30 = vsub.f32 %v3231_v34, %v1097_v52  ;;  %1369 = vadd.xlane.f32.xlu0 %v1368_v18  ;;  %1150 = vmax.xlane.f32.xlu1 %v3979_v31  ;;  %v610_v32 = vld [vmem:[%s3356_s20 + $0x1e8] sm:$0xff]  ;;  %v612_v34 = vld [vmem:[%s3356_s20 + $0x1f8] sm:$0xff] }
 0x2f4   : > { %v1371_v26 = vadd.f32 %v3495_v51, %v3489_v53  ;;  %v644_v55 = vpack.c.bf16 %v612_v34, %v610_v32  ;;  %1635 = vmatpush1.bf16.msra.mxu1 %v641_v12  ;;  %v643_v58 = vpack.c.bf16 %v611_v63, %v609_v16  ;;  %v3983_v63 = vld [vmem:[#allocation20_spill] sm:$0xff] }
 0x2f5   : > { %2377 = vpow2.f32 %v1262_v19  ;;  %v1266_v1 = vmul.f32 1.442695, %v1180_v14  ;;  %v1268_v44 = vmul.f32 1.442695, %v1181_v30 }
 0x2f6   : > { %2379 = vpow2.f32 %v1264_v57  ;;  %1636 = vmatprep.subr.bf16.mxu1 %v644_v55 }
 0x2f7   : > { %v3510_v59 = vpop.eup %2369  ;;  %2381 = vpow2.f32 %v1266_v1  ;;  %1372 = vadd.xlane.f32.xlu1 %v1371_v26  ;;  %1153 = vmax.xlane.f32.xlu0 %v3980_v21 }
 0x2f8   : > { %v3517_v45 = vpop.eup %2371  ;;  %2383 = vpow2.f32 %v1268_v44  ;;  %v1100_v11 = vpop.xlane.xlu0 %1099  ;;  %1637 = vmatpush1.bf16.msra.mxu1 %v643_v58  ;;  %v3982_v44 = vld [vmem:[#allocation19_spill] sm:$0xff]  ;;  %v3984_v58 = vld [vmem:[#allocation21_spill] sm:$0xff] }
 0x2f9   : > { %v3519_v3 = vpop.eup %2373  ;;  %v1182_v18 = vsub.f32 %v3235_v36, %v1100_v11  ;;  %v1183_v52 = vsub.f32 %v3237_v37, %v1100_v11  ;;  %v1374_v8 = vadd.f32 %v3517_v45, %v3510_v59 }
 0x2fa   : > { %v3525_v35 = vpop.eup %2375  ;;  %v1103_v19 = vpop.xlane.xlu1 %1102 }
 0x2fb   : > { %v1270_v57 = vmul.f32 1.442695, %v1182_v18  ;;  %v1272_v14 = vmul.f32 1.442695, %v1183_v52  ;;  %v1184_v30 = vsub.f32 %v3239_v38, %v1103_v19  ;;  %v1185_v31 = vsub.f32 %v3243_v40, %v1103_v19  ;;  %1375 = vadd.xlane.f32.xlu0 %v1374_v8  ;;  %1156 = vmax.xlane.f32.xlu1 %v3981_v23 }
 0x2fc   : > { %v1377_v25 = vadd.f32 %v3525_v35, %v3519_v3 }
 0x2fd   : > { %2385 = vpow2.f32 %v1270_v57  ;;  %v1274_v36 = vmul.f32 1.442695, %v1184_v30  ;;  %v1276_v37 = vmul.f32 1.442695, %v1185_v31  ;;  %v3985_v31 = vld [vmem:[#allocation22_spill] sm:$0xff] }
 0x2fe   : > { %2387 = vpow2.f32 %v1272_v14 }
 0x2ff   : > { %v3534_v4 = vpop.eup %2377  ;;  %2389 = vpow2.f32 %v1274_v36  ;;  %1378 = vadd.xlane.f32.xlu1 %v1377_v25  ;;  %v3986_v36 = vld [vmem:[#allocation23_spill] sm:$0xff] }
 0x300   : > { %v3536_v38 = vpop.eup %2379  ;;  %2391 = vpow2.f32 %v1276_v37  ;;  %v1106_v40 = vpop.xlane.xlu0 %1105 }
 0x301   : > { %v3538_v12 = vpop.eup %2381  ;;  %v1186_v1 = vsub.f32 %v3247_v42, %v1106_v40  ;;  %v1187_v26 = vsub.f32 %v3982_v44, %v1106_v40  ;;  %v1380_v32 = vadd.f32 %v3536_v38, %v3534_v4 }
 0x302   : > { %v3544_v34 = vpop.eup %2383  ;;  %v1109_v21 = vpop.xlane.xlu1 %1108 }
 0x303   : > { %v1278_v55 = vmul.f32 1.442695, %v1186_v1  ;;  %v1280_v16 = vmul.f32 1.442695, %v1187_v26  ;;  %v1188_v11 = vsub.f32 %v3983_v63, %v1109_v21  ;;  %v1189_v18 = vsub.f32 %v3984_v58, %v1109_v21  ;;  %1381 = vadd.xlane.f32.xlu0 %v1380_v32  ;;  %v3987_v32 = vld [vmem:[#allocation24_spill] sm:$0xff] }
 0x304   : > { %v1383_v52 = vadd.f32 %v3544_v34, %v3538_v12 }
 0x305   : > { %2393 = vpow2.f32 %v1278_v55  ;;  %v1282_v42 = vmul.f32 1.442695, %v1188_v11  ;;  %v1284_v8 = vmul.f32 1.442695, %v1189_v18  ;;  %v3988_v55 = vld [vmem:[#allocation25_spill] sm:$0xff] }
 0x306   : > { %2395 = vpow2.f32 %v1280_v16  ;;  %1384 = vadd.xlane.f32.xlu1 %v1383_v52 }
 0x307   : > { %v3550_v19 = vpop.eup %2385  ;;  %2397 = vpow2.f32 %v1282_v42 }
 0x308   : > { %v3552_v57 = vpop.eup %2387  ;;  %2399 = vpow2.f32 %v1284_v8  ;;  %v1112_v14 = vpop.xlane.xlu0 %1111 }
 0x309   : > { %v3554_v30 = vpop.eup %2389  ;;  %v1190_v23 = vsub.f32 %v3985_v31, %v1112_v14  ;;  %v1191_v37 = vsub.f32 %v3986_v36, %v1112_v14  ;;  %v1386_v25 = vadd.f32 %v3552_v57, %v3550_v19  ;;  %v3991_v14 = vld [vmem:[#allocation26_spill] sm:$0xff] }
 0x30a   : > { %v3560_v40 = vpop.eup %2391  ;;  %v1115_v1 = vpop.xlane.xlu1 %1114 }
 0x30b   : > { %v1286_v44 = vmul.f32 1.442695, %v1190_v23  ;;  %v1288_v26 = vmul.f32 1.442695, %v1191_v37  ;;  %v1192_v21 = vsub.f32 %v3987_v32, %v1115_v1  ;;  %v1193_v16 = vsub.f32 %v3988_v55, %v1115_v1  ;;  %1387 = vadd.xlane.f32.xlu0 %v1386_v25  ;;  %v3992_v23 = vld [vmem:[#allocation27_spill] sm:$0xff]  ;;  %v3994_v32 = vld [vmem:[#allocation28_spill] sm:$0xff] }
 0x30c   : > { %v1389_v63 = vadd.f32 %v3560_v40, %v3554_v30  ;;  %v3995_v55 = vld [vmem:[#allocation29_spill] sm:$0xff] }
 0x30d   : > { %2401 = vpow2.f32 %v1286_v44  ;;  %v1290_v11 = vmul.f32 1.442695, %v1192_v21  ;;  %v1292_v58 = vmul.f32 1.442695, %v1193_v16 }
 0x30e   : > { %2403 = vpow2.f32 %v1288_v26  ;;  %1390 = vadd.xlane.f32.xlu1 %v1389_v63 }
 0x30f   : > { %v3566_v18 = vpop.eup %2393  ;;  %2405 = vpow2.f32 %v1290_v11 }
 0x310   : > { %3989 = vst [vmem:[#allocation19_spill] sm:$0xff] %v3566_v18  ;;  %v3568_v52 = vpop.eup %2395  ;;  %2407 = vpow2.f32 %v1292_v58  ;;  %v1118_v42 = vpop.xlane.xlu0 %1117 }
 0x311   : > { %v3570_v8 = vpop.eup %2397  ;;  %v1194_v31 = vsub.f32 %v3991_v14, %v1118_v42  ;;  %v1195_v36 = vsub.f32 %v3992_v23, %v1118_v42  ;;  %v1392_v37 = vadd.f32 %v3568_v52, %v3566_v18  ;;  %v4003_v18 = vld [vmem:[#allocation33_spill] sm:$0xff] }
 0x312   : > { %3990 = vst [vmem:[#allocation20_spill] sm:$0xff] %v3570_v8  ;;  %v3576_v25 = vpop.eup %2399  ;;  %v1121_v1 = vpop.xlane.xlu1 %1120 }
 0x313   : > { %3993 = vst [vmem:[#allocation21_spill] sm:$0xff] %v3576_v25  ;;  %v1294_v44 = vmul.f32 1.442695, %v1194_v31  ;;  %v1296_v26 = vmul.f32 1.442695, %v1195_v36  ;;  %v1196_v21 = vsub.f32 %v3994_v32, %v1121_v1  ;;  %v1197_v16 = vsub.f32 %v3995_v55, %v1121_v1  ;;  %1393 = vadd.xlane.f32.xlu0 %v1392_v37  ;;  %v3999_v36 = vld [vmem:[#allocation30_spill] sm:$0xff] }
 0x314   : > { %v1395_v63 = vadd.f32 %v3576_v25, %v3570_v8  ;;  %v4000_v37 = vld [vmem:[#allocation31_spill] sm:$0xff] }
 0x315   : > { %2409 = vpow2.f32 %v1294_v44  ;;  %v1298_v11 = vmul.f32 1.442695, %v1196_v21  ;;  %v1300_v58 = vmul.f32 1.442695, %v1197_v16 }
 0x316   : > { %2411 = vpow2.f32 %v1296_v26  ;;  %1396 = vadd.xlane.f32.xlu1 %v1395_v63  ;;  %v4002_v63 = vld [vmem:[#allocation32_spill] sm:$0xff] }
 0x317   : > { %v3582_v42 = vpop.eup %2401  ;;  %2413 = vpow2.f32 %v1298_v11 }
 0x318   : > { %3996 = vst [vmem:[#allocation22_spill] sm:$0xff] %v3582_v42  ;;  %v3584_v14 = vpop.eup %2403  ;;  %2415 = vpow2.f32 %v1300_v58  ;;  %v1124_v31 = vpop.xlane.xlu0 %1123 }
 0x319   : > { %3997 = vst [vmem:[#allocation23_spill] sm:$0xff] %v3584_v14  ;;  %v3586_v23 = vpop.eup %2405  ;;  %v1198_v1 = vsub.f32 %v3999_v36, %v1124_v31  ;;  %v1199_v32 = vsub.f32 %v4000_v37, %v1124_v31  ;;  %v1398_v44 = vadd.f32 %v3584_v14, %v3582_v42  ;;  %v4006_v42 = vld [vmem:[#allocation36_spill] sm:$0xff] }
 0x31a   : > { %3998 = vst [vmem:[#allocation24_spill] sm:$0xff] %v3586_v23  ;;  %v3592_v21 = vpop.eup %2407  ;;  %v1127_v26 = vpop.xlane.xlu1 %1126 }
 0x31b   : > { %4001 = vst [vmem:[#allocation25_spill] sm:$0xff] %v3592_v21  ;;  %v1302_v55 = vmul.f32 1.442695, %v1198_v1  ;;  %v1304_v16 = vmul.f32 1.442695, %v1199_v32  ;;  %v1200_v11 = vsub.f32 %v4002_v63, %v1127_v26  ;;  %v1201_v8 = vsub.f32 %v4003_v18, %v1127_v26  ;;  %1399 = vadd.xlane.f32.xlu0 %v1398_v44  ;;  %v4004_v63 = vld [vmem:[#allocation34_spill] sm:$0xff] }
 0x31c   : > { %v1401_v58 = vadd.f32 %v3592_v21, %v3586_v23  ;;  %v4005_v44 = vld [vmem:[#allocation35_spill] sm:$0xff]  ;;  %v4007_v23 = vld [vmem:[#allocation37_spill] sm:$0xff] }
 0x31d   : > { %2417 = vpow2.f32 %v1302_v55  ;;  %v1306_v36 = vmul.f32 1.442695, %v1200_v11  ;;  %v1308_v25 = vmul.f32 1.442695, %v1201_v8 }
 0x31e   : > { %2419 = vpow2.f32 %v1304_v16  ;;  %1402 = vadd.xlane.f32.xlu1 %v1401_v58 }
 0x31f   : > { %v3598_v31 = vpop.eup %2409  ;;  %2421 = vpow2.f32 %v1306_v36 }
 0x320   : > { %v3600_v37 = vpop.eup %2411  ;;  %2423 = vpow2.f32 %v1308_v25  ;;  %v1130_v1 = vpop.xlane.xlu0 %1129 }
 0x321   : > { %v3602_v32 = vpop.eup %2413  ;;  %v1202_v18 = vsub.f32 %v4004_v63, %v1130_v1  ;;  %v1203_v26 = vsub.f32 %v4005_v44, %v1130_v1  ;;  %v1404_v55 = vadd.f32 %v3600_v37, %v3598_v31 }
 0x322   : > { %v3608_v11 = vpop.eup %2415  ;;  %v1133_v8 = vpop.xlane.xlu1 %1132 }
 0x323   : > { %v1310_v16 = vmul.f32 1.442695, %v1202_v18  ;;  %v1312_v58 = vmul.f32 1.442695, %v1203_v26  ;;  %v1204_v36 = vsub.f32 %v4006_v42, %v1133_v8  ;;  %v1205_v21 = vsub.f32 %v4007_v23, %v1133_v8  ;;  %1405 = vadd.xlane.f32.xlu0 %v1404_v55 }
 0x324   : > { %v1407_v25 = vadd.f32 %v3608_v11, %v3602_v32 }
 0x325   : > { %2425 = vpow2.f32 %v1310_v16  ;;  %v1314_v63 = vmul.f32 1.442695, %v1204_v36  ;;  %v1316_v14 = vmul.f32 1.442695, %v1205_v21 }
 0x326   : > { %2427 = vpow2.f32 %v1312_v58  ;;  %1408 = vadd.xlane.f32.xlu1 %v1407_v25 }
 0x327   : > { %v3614_v1 = vpop.eup %2417  ;;  %2429 = vpow2.f32 %v1314_v63 }
 0x328   : > { %4008 = vst [vmem:[#allocation26_spill] sm:$0xff] %v3614_v1  ;;  %v3616_v44 = vpop.eup %2419  ;;  %2431 = vpow2.f32 %v1316_v14 }
 0x329   : > { %v3618_v18 = vpop.eup %2421  ;;  %v1410_v42 = vadd.f32 %v3616_v44, %v3614_v1 }
 0x32a   : > { %4009 = vst [vmem:[#allocation27_spill] sm:$0xff] %v3618_v18  ;;  %v3622_v23 = vpop.eup %2423 }
 0x32b   : > { %4010 = vst [vmem:[#allocation28_spill] sm:$0xff] %v3622_v23  ;;  %1411 = vadd.xlane.f32.xlu0 %v1410_v42  ;;  %v1413_v26 = vadd.f32 %v3622_v23, %v3618_v18 }
 0x32d   : > { %1414 = vadd.xlane.f32.xlu1 %v1413_v26 }
 0x32f   : > { %v3626_v21 = vpop.eup %2425 }
 0x330   : > { %4011 = vst [vmem:[#allocation29_spill] sm:$0xff] %v3626_v21  ;;  %v3628_v55 = vpop.eup %2427 }
 0x331   : > { %4012 = vst [vmem:[#allocation30_spill] sm:$0xff] %v3628_v55  ;;  %v3630_v8 = vpop.eup %2429  ;;  %v1416_v14 = vadd.f32 %v3628_v55, %v3626_v21 }
 0x332   : > { %4013 = vst [vmem:[#allocation31_spill] sm:$0xff] %v3630_v8  ;;  %v3634_v16 = vpop.eup %2431 }
 0x333   : > { %4014 = vst [vmem:[#allocation32_spill] sm:$0xff] %v3634_v16  ;;  %1417 = vadd.xlane.f32.xlu0 %v1416_v14  ;;  %v1419_v58 = vadd.f32 %v3634_v16, %v3630_v8 }
 0x335   : > { %1420 = vadd.xlane.f32.xlu1 %v1419_v58 }
 0x368   : > { %v1352_v36 = vpop.xlane.xlu0 %1351 }
 0x369   : > { %2433 = vrcp.f32 %v1352_v36 }
 0x36b   : > { %v1355_v25 = vpop.xlane.xlu1 %1354 }
 0x36c   : > { %2435 = vrcp.f32 %v1355_v25  ;;  %v1136_v63 = vpop.xlane.xlu0 %1135 }
 0x36d   : > { %v1206_v42 = vsub.f32 %v3307_v27, %v1136_v63  ;;  %v1207_v26 = vsub.f32 %v3309_v29, %v1136_v63 }
 0x36f   : > { %v1318_v1 = vmul.f32 1.442695, %v1206_v42  ;;  %v1320_v18 = vmul.f32 1.442695, %v1207_v26  ;;  %v1139_v23 = vpop.xlane.xlu1 %1138 }
 0x370   : > { %v1208_v21 = vsub.f32 %v3311_v33, %v1139_v23  ;;  %v1209_v14 = vsub.f32 %v3315_v39, %v1139_v23  ;;  %v1358_v55 = vpop.xlane.xlu0 %1357 }
 0x371   : > { %2437 = vpow2.f32 %v1318_v1 }
 0x372   : > { %2439 = vpow2.f32 %v1320_v18  ;;  %v1322_v58 = vmul.f32 1.442695, %v1208_v21  ;;  %v1324_v8 = vmul.f32 1.442695, %v1209_v14 }
 0x373   : > { %v2434_v36 = vpop.eup %2433  ;;  %2441 = vrcp.f32 %v1358_v55 }
 0x374   : > { %2443 = vpow2.f32 %v1322_v58  ;;  %v1361_v25 = vpop.xlane.xlu1 %1360  ;;  %v1142_v16 = vpop.xlane.xlu0 %1141  ;;  %v1479_v33 = vmul.f32 %v2434_v36, %v3410_v50  ;;  %v1478_v42 = vmul.f32 %v2434_v36, %v3406_v47 }
 0x375   : > { %2445 = vpow2.f32 %v1324_v8  ;;  %v1210_v27 = vsub.f32 %v3319_v46, %v1142_v16  ;;  %v1211_v29 = vsub.f32 %v3321_v49, %v1142_v16 }
 0x376   : > { %v2436_v63 = vpop.eup %2435  ;;  %2447 = vrcp.f32 %v1361_v25 }
 0x377   : > { %v1326_v39 = vmul.f32 1.442695, %v1210_v27  ;;  %v1328_v23 = vmul.f32 1.442695, %v1211_v29  ;;  %v1481_v1 = vmul.f32 %v2436_v63, %v3418_v7  ;;  %v1480_v18 = vmul.f32 %v2436_v63, %v3412_v2 }
 0x378   : > { %v1364_v21 = vpop.xlane.xlu0 %1363  ;;  %v1145_v55 = vpop.xlane.xlu1 %1144 }
 0x379   : > { %2449 = vpow2.f32 %v1326_v39  ;;  %v1212_v8 = vsub.f32 %v3323_v54, %v1145_v55  ;;  %v1213_v46 = vsub.f32 %v3327_v61, %v1145_v55  ;;  %v1543_v49 = vpack.c.bf16 %v1481_v1, %v1479_v33 }
 0x37a   : > { %2451 = vpow2.f32 %v1328_v23  ;;  %v1542_v16 = vpack.c.bf16 %v1480_v18, %v1478_v42 }
 0x37b   : > { %v3650_v26 = vpop.eup %2437  ;;  %2453 = vrcp.f32 %v1364_v21  ;;  %v1330_v50 = vmul.f32 1.442695, %v1212_v8  ;;  %v1332_v14 = vmul.f32 1.442695, %v1213_v46  ;;  %1638 = vmatprep.mubr.bf16.mxu1 %v1543_v49 }
 0x37c   : > { %v3652_v7 = vpop.eup %2439  ;;  %1639 = vmatmul.mubr.bf16.vlgmr.msra.gmra.mrb[0].mxu1 %v1542_v16  ;;  %v1367_v2 = vpop.xlane.xlu1 %1366 }
 0x37d   : > { %v1148_v58 = vpop.xlane.xlu0 %1147  ;;  %v2442_v47 = vpop.eup %2441  ;;  %2455 = vpow2.f32 %v1330_v50  ;;  %v1422_v36 = vadd.f32 %v3652_v7, %v3650_v26 }
 0x37e   : > { %v1214_v54 = vsub.f32 %v3331_v5, %v1148_v58  ;;  %v1215_v61 = vsub.f32 %v3333_v10, %v1148_v58  ;;  %v3658_v25 = vpop.eup %2443  ;;  %2457 = vpow2.f32 %v1332_v14  ;;  %v1483_v10 = vmul.f32 %v2442_v47, %v3435_v6 }
 0x37f   : > { %v3660_v27 = vpop.eup %2445  ;;  %2459 = vrcp.f32 %v1367_v2  ;;  %1423 = vadd.xlane.f32.xlu0 %v1422_v36  ;;  %v1482_v55 = vmul.f32 %v2442_v47, %v3428_v62 }
 0x380   : > { %v1334_v29 = vmul.f32 1.442695, %v1214_v54  ;;  %v1336_v63 = vmul.f32 1.442695, %v1215_v61  ;;  %v2448_v33 = vpop.eup %2447  ;;  %v1151_v23 = vpop.xlane.xlu1 %1150  ;;  %v1425_v5 = vadd.f32 %v3660_v27, %v3658_v25 }
 0x381   : > { %v1370_v39 = vpop.xlane.xlu0 %1369  ;;  %v1216_v1 = vsub.f32 %v3335_v20, %v1151_v23  ;;  %v1217_v18 = vsub.f32 %v3339_v41, %v1151_v23  ;;  %v1485_v21 = vmul.f32 %v2448_v33, %v3448_v9  ;;  %v1484_v42 = vmul.f32 %v2448_v33, %v3444_v0 }
 0x382   : > { %2461 = vpow2.f32 %v1334_v29  ;;  %1426 = vadd.xlane.f32.xlu1 %v1425_v5 }
 0x383   : > { %2463 = vpow2.f32 %v1336_v63  ;;  %v3670_v8 = vpop.eup %2449  ;;  %v1338_v46 = vmul.f32 1.442695, %v1216_v1  ;;  %v1340_v49 = vmul.f32 1.442695, %v1217_v18  ;;  %v1545_v16 = vpack.c.bf16 %v1485_v21, %v1483_v10 }
 0x384   : > { %v3672_v50 = vpop.eup %2451  ;;  %2465 = vrcp.f32 %v1370_v39  ;;  %v1373_v6 = vpop.xlane.xlu1 %1372  ;;  %v1544_v14 = vpack.c.bf16 %v1484_v42, %v1482_v55 }
 0x385   : > { %v1154_v20 = vpop.xlane.xlu0 %1153  ;;  %v2454_v41 = vpop.eup %2453  ;;  %2467 = vpow2.f32 %v1338_v46  ;;  %1648 = vmatprep.mubr.bf16.mxu1 %v1545_v16  ;;  %v1428_v0 = vadd.f32 %v3672_v50, %v3670_v8 }
 0x386   : > { %v1218_v9 = vsub.f32 %v3343_v56, %v1154_v20  ;;  %v1219_v62 = vsub.f32 %v3345_v22, %v1154_v20  ;;  %2469 = vpow2.f32 %v1340_v49  ;;  %1649 = vmatmul.mubr.bf16.gmra.mrb[4].mxu1 %v1544_v14  ;;  %v1487_v36 = vmul.f32 %v2454_v41, %v3457_v24 }
 0x387   : > { %v3678_v2 = vpop.eup %2455  ;;  %2471 = vrcp.f32 %v1373_v6  ;;  %1429 = vadd.xlane.f32.xlu0 %v1428_v0  ;;  %v1486_v23 = vmul.f32 %v2454_v41, %v3452_v60 }
 0x388   : > { %v1342_v58 = vmul.f32 1.442695, %v1218_v9  ;;  %v1344_v47 = vmul.f32 1.442695, %v1219_v62  ;;  %v3680_v54 = vpop.eup %2457  ;;  %v1157_v61 = vpop.xlane.xlu1 %1156 }
 0x389   : > { %v2460_v29 = vpop.eup %2459  ;;  %v1376_v56 = vpop.xlane.xlu0 %1375  ;;  %v1220_v22 = vsub.f32 %v3347_v17, %v1157_v61  ;;  %v1221_v63 = vsub.f32 %v3351_v15, %v1157_v61  ;;  %v1431_v33 = vadd.f32 %v3680_v54, %v3678_v2 }
 0x38a   : > { %2473 = vpow2.f32 %v1342_v58  ;;  %v1489_v39 = vmul.f32 %v2460_v29, %v3467_v43  ;;  %v1488_v5 = vmul.f32 %v2460_v29, %v3459_v48 }
 0x38b   : > { %2475 = vpow2.f32 %v1344_v47  ;;  %v1346_v24 = vmul.f32 1.442695, %v1220_v22  ;;  %v1348_v1 = vmul.f32 1.442695, %v1221_v63  ;;  %1432 = vadd.xlane.f32.xlu1 %v1431_v33 }
 0x38c   : > { %v3690_v10 = vpop.eup %2461  ;;  %2477 = vrcp.f32 %v1376_v56  ;;  %v1547_v17 = vpack.c.bf16 %v1489_v39, %v1487_v36  ;;  %v1379_v15 = vpop.xlane.xlu1 %1378  ;;  %v1546_v21 = vpack.c.bf16 %v1488_v5, %v1486_v23 }
 0x38d   : > { %v3692_v18 = vpop.eup %2463  ;;  %2479 = vpow2.f32 %v1346_v24 }
 0x38e   : > { %v1434_v55 = vadd.f32 %v3692_v18, %v3690_v10  ;;  %v2466_v43 = vpop.eup %2465  ;;  %2481 = vpow2.f32 %v1348_v1  ;;  %1658 = vmatprep.mubr.bf16.mxu1 %v1547_v17 }
 0x38f   : > { %v3696_v60 = vpop.eup %2467  ;;  %2483 = vrcp.f32 %v1379_v15  ;;  %1659 = vmatmul.mubr.bf16.gmra.mrb[8].mxu1 %v1546_v21  ;;  %v1491_v16 = vmul.f32 %v2466_v43, %v3487_v13  ;;  %v1490_v20 = vmul.f32 %v2466_v43, %v3480_v28 }
 0x390   : > { %1435 = vadd.xlane.f32.xlu0 %v1434_v55  ;;  %v3698_v48 = vpop.eup %2469  ;;  %v1382_v42 = vpop.xlane.xlu0 %1381 }
 0x391   : > { %v2472_v46 = vpop.eup %2471  ;;  %v1437_v49 = vadd.f32 %v3698_v48, %v3696_v60  ;;  %2485 = vrcp.f32 %v1382_v42 }
 0x392   : > { %v1493_v6 = vmul.f32 %v2472_v46, %v3495_v51  ;;  %v1492_v14 = vmul.f32 %v2472_v46, %v3489_v53 }
 0x393   : > { %1438 = vadd.xlane.f32.xlu1 %v1437_v49  ;;  %v1385_v9 = vpop.xlane.xlu1 %1384 }
 0x394   : > { %v3706_v41 = vpop.eup %2473  ;;  %2487 = vrcp.f32 %v1385_v9  ;;  %v1549_v0 = vpack.c.bf16 %v1493_v6, %v1491_v16  ;;  %v1548_v58 = vpack.c.bf16 %v1492_v14, %v1490_v20  ;;  %v4015_v9 = vld [vmem:[#allocation21_spill] sm:$0xff] }
 0x395   : > { %v3708_v62 = vpop.eup %2475 }
 0x396   : > { %v1440_v47 = vadd.f32 %v3708_v62, %v3706_v41  ;;  %v2478_v13 = vpop.eup %2477  ;;  %1668 = vmatprep.mubr.bf16.mxu1 %v1549_v0 }
 0x397   : > { %v3712_v61 = vpop.eup %2479  ;;  %1669 = vmatmul.mubr.bf16.gmra.mrb[12].mxu1 %v1548_v58  ;;  %v1495_v29 = vmul.f32 %v2478_v13, %v3517_v45  ;;  %v1494_v22 = vmul.f32 %v2478_v13, %v3510_v59  ;;  %v4016_v58 = vld [vmem:[#allocation20_spill] sm:$0xff]  ;;  %v4017_v13 = vld [vmem:[#allocation19_spill] sm:$0xff] }
 0x398   : > { %1441 = vadd.xlane.f32.xlu0 %v1440_v47  ;;  %v3714_v28 = vpop.eup %2481  ;;  %v1388_v53 = vpop.xlane.xlu0 %1387 }
 0x399   : > { %v2484_v51 = vpop.eup %2483  ;;  %v1443_v36 = vadd.f32 %v3714_v28, %v3712_v61  ;;  %2489 = vrcp.f32 %v1388_v53 }
 0x39a   : > { %v1497_v56 = vmul.f32 %v2484_v51, %v3525_v35  ;;  %v1496_v63 = vmul.f32 %v2484_v51, %v3519_v3 }
 0x39b   : > { %1444 = vadd.xlane.f32.xlu1 %v1443_v36  ;;  %v1391_v33 = vpop.xlane.xlu1 %1390  ;;  %v2486_v39 = vpop.eup %2485 }
 0x39c   : > { %2491 = vrcp.f32 %v1391_v33  ;;  %v1551_v23 = vpack.c.bf16 %v1497_v56, %v1495_v29  ;;  %v1550_v5 = vpack.c.bf16 %v1496_v63, %v1494_v22  ;;  %v1499_v1 = vmul.f32 %v2486_v39, %v3536_v38  ;;  %v4018_v29 = vld [vmem:[#allocation23_spill] sm:$0xff]  ;;  %v4019_v22 = vld [vmem:[#allocation25_spill] sm:$0xff] }
 0x39d   : > { %v1498_v3 = vmul.f32 %v2486_v39, %v3534_v4  ;;  %v4020_v39 = vld [vmem:[#allocation24_spill] sm:$0xff] }
 0x39e   : > { %v2488_v24 = vpop.eup %2487  ;;  %1678 = vmatprep.mubr.bf16.mxu1 %v1551_v23 }
 0x39f   : > { %1679 = vmatmul.mubr.bf16.gmra.mrb[16].mxu1 %v1550_v5  ;;  %v1501_v45 = vmul.f32 %v2488_v24, %v3544_v34  ;;  %v1500_v35 = vmul.f32 %v2488_v24, %v3538_v12  ;;  %v4021_v24 = vld [vmem:[#allocation22_spill] sm:$0xff] }
 0x3a0   : > { %v1394_v17 = vpop.xlane.xlu0 %1393 }
 0x3a1   : > { %v1553_v15 = vpack.c.bf16 %v1501_v45, %v1499_v1  ;;  %2493 = vrcp.f32 %v1394_v17  ;;  %v1552_v55 = vpack.c.bf16 %v1500_v35, %v1498_v3 }
 0x3a3   : > { %1688 = vmatprep.mubr.bf16.mxu1 %v1553_v15  ;;  %v1397_v59 = vpop.xlane.xlu1 %1396  ;;  %v2490_v21 = vpop.eup %2489 }
 0x3a4   : > { %2495 = vrcp.f32 %v1397_v59  ;;  %v1503_v42 = vmul.f32 %v2490_v21, %v3552_v57  ;;  %v1502_v16 = vmul.f32 %v2490_v21, %v3550_v19 }
 0x3a6   : > { %v2492_v43 = vpop.eup %2491 }
 0x3a7   : > { %1689 = vmatmul.mubr.bf16.gmra.mrb[20].mxu1 %v1552_v55  ;;  %v1505_v38 = vmul.f32 %v2492_v43, %v3560_v40  ;;  %v1504_v49 = vmul.f32 %v2492_v43, %v3554_v30 }
 0x3a8   : > { %v1400_v46 = vpop.xlane.xlu0 %1399 }
 0x3a9   : > { %v1555_v34 = vpack.c.bf16 %v1505_v38, %v1503_v42  ;;  %2497 = vrcp.f32 %v1400_v46  ;;  %v1554_v4 = vpack.c.bf16 %v1504_v49, %v1502_v16 }
 0x3ab   : > { %1698 = vmatprep.mubr.bf16.mxu1 %v1555_v34  ;;  %v1403_v12 = vpop.xlane.xlu1 %1402  ;;  %v2494_v6 = vpop.eup %2493 }
 0x3ac   : > { %2499 = vrcp.f32 %v1403_v12  ;;  %v1507_v14 = vmul.f32 %v2494_v6, %v3568_v52  ;;  %v1506_v53 = vmul.f32 %v2494_v6, %v4017_v13  ;;  %v4022_v12 = vld [vmem:[#allocation28_spill] sm:$0xff] }
 0x3ae   : > { %v2496_v20 = vpop.eup %2495 }
 0x3af   : > { %1699 = vmatmul.mubr.bf16.gmra.mrb[24].mxu1 %v1554_v4  ;;  %v1509_v57 = vmul.f32 %v2496_v20, %v4015_v9  ;;  %v1508_v47 = vmul.f32 %v2496_v20, %v4016_v58  ;;  %v4024_v20 = vld [vmem:[#allocation26_spill] sm:$0xff] }
 0x3b0   : > { %v1406_v0 = vpop.xlane.xlu0 %1405 }
 0x3b1   : > { %v1557_v40 = vpack.c.bf16 %v1509_v57, %v1507_v14  ;;  %2501 = vrcp.f32 %v1406_v0  ;;  %v1556_v19 = vpack.c.bf16 %v1508_v47, %v1506_v53  ;;  %v4025_v57 = vld [vmem:[#allocation30_spill] sm:$0xff]  ;;  %v4027_v47 = vld [vmem:[#allocation31_spill] sm:$0xff] }
 0x3b3   : > { %1708 = vmatprep.mubr.bf16.mxu1 %v1557_v40  ;;  %v1409_v30 = vpop.xlane.xlu1 %1408  ;;  %v2498_v51 = vpop.eup %2497  ;;  %v4026_v40 = vld [vmem:[#allocation32_spill] sm:$0xff] }
 0x3b4   : > { %2503 = vrcp.f32 %v1409_v30  ;;  %v1511_v56 = vmul.f32 %v2498_v51, %v4018_v29  ;;  %v1510_v1 = vmul.f32 %v2498_v51, %v4021_v24  ;;  %v4028_v30 = vld [vmem:[#allocation29_spill] sm:$0xff] }
 0x3b6   : > { %v2500_v36 = vpop.eup %2499 }
 0x3b7   : > { %1709 = vmatmul.mubr.bf16.gmra.mrb[28].mxu1 %v1556_v19  ;;  %v1513_v52 = vmul.f32 %v2500_v36, %v4019_v22  ;;  %v1512_v23 = vmul.f32 %v2500_v36, %v4020_v39 }
 0x3b8   : > { %v1412_v63 = vpop.xlane.xlu0 %1411 }
 0x3b9   : > { %2505 = vrcp.f32 %v1412_v63  ;;  %v1559_v33 = vpack.c.bf16 %v1513_v52, %v1511_v56  ;;  %v1558_v17 = vpack.c.bf16 %v1512_v23, %v1510_v1 }
 0x3ba   : > { %v1415_v5 = vpop.xlane.xlu1 %1414 }
 0x3bb   : > { %1718 = vmatprep.mubr.bf16.mxu1 %v1559_v33  ;;  %2507 = vrcp.f32 %v1415_v5  ;;  %v2502_v45 = vpop.eup %2501 }
 0x3bc   : > { %v1515_v35 = vmul.f32 %v2502_v45, %v3600_v37  ;;  %v1514_v38 = vmul.f32 %v2502_v45, %v3598_v31 }
 0x3be   : > { %v2504_v15 = vpop.eup %2503 }
 0x3bf   : > { %1719 = vmatmul.mubr.bf16.gmra.mrb[32].mxu1 %v1558_v17  ;;  %v1517_v59 = vmul.f32 %v2504_v15, %v3608_v11  ;;  %v1516_v55 = vmul.f32 %v2504_v15, %v3602_v32  ;;  %v4023_v11 = vld [vmem:[#allocation27_spill] sm:$0xff] }
 0x3c0   : > { %v1418_v3 = vpop.xlane.xlu0 %1417 }
 0x3c1   : > { %2509 = vrcp.f32 %v1418_v3  ;;  %v1561_v21 = vpack.c.bf16 %v1517_v59, %v1515_v35  ;;  %v1560_v34 = vpack.c.bf16 %v1516_v55, %v1514_v38 }
 0x3c2   : > { %v1421_v43 = vpop.xlane.xlu1 %1420 }
 0x3c3   : > { %v2506_v42 = vpop.eup %2505  ;;  %1728 = vmatprep.mubr.bf16.mxu1 %v1561_v21  ;;  %2511 = vrcp.f32 %v1421_v43 }
 0x3c4   : > { %v1519_v49 = vmul.f32 %v2506_v42, %v3616_v44  ;;  %v1518_v32 = vmul.f32 %v2506_v42, %v4024_v20 }
 0x3c5   : > { %v2508_v46 = vpop.eup %2507 }
 0x3c6   : > { %v1521_v16 = vmul.f32 %v2508_v46, %v4022_v12  ;;  %v1520_v6 = vmul.f32 %v2508_v46, %v4023_v11 }
 0x3c7   : > { %1729 = vmatmul.mubr.bf16.gmra.mrb[36].mxu1 %v1560_v34 }
 0x3c8   : > { %v1563_v37 = vpack.c.bf16 %v1521_v16, %v1519_v49  ;;  %v1562_v9 = vpack.c.bf16 %v1520_v6, %v1518_v32 }
 0x3ca   : > { %1738 = vmatprep.mubr.bf16.mxu1 %v1563_v37 }
 0x3cb   : > { %v2510_v4 = vpop.eup %2509 }
 0x3cc   : > { %v1523_v0 = vmul.f32 %v2510_v4, %v4025_v57  ;;  %v1522_v13 = vmul.f32 %v2510_v4, %v4028_v30 }
 0x3cd   : > { %v2512_v14 = vpop.eup %2511 }
 0x3ce   : > { %v1525_v31 = vmul.f32 %v2512_v14, %v4026_v40  ;;  %v1524_v44 = vmul.f32 %v2512_v14, %v4027_v47 }
 0x3cf   : > { %1739 = vmatmul.mubr.bf16.gmra.mrb[40].mxu1 %v1562_v9 }
 0x3d0   : > { %v1565_v58 = vpack.c.bf16 %v1525_v31, %v1523_v0  ;;  %v1564_v53 = vpack.c.bf16 %v1524_v44, %v1522_v13 }
 0x3d2   : > { %1748 = vmatprep.mubr.bf16.mxu1 %v1565_v58 }
 0x3d7   : > { %1749 = vmatmul.mubr.bf16.gmra.mrb[44].mxu1 %v1564_v53 }
 0x40c   : > { %v1424_v51 = vpop.xlane.xlu0 %1423 }
 0x40d   : > { %2513 = vrcp.f32 %v1424_v51 }
 0x40f   : > { %v1427_v19 = vpop.xlane.xlu1 %1426 }
 0x410   : > { %2515 = vrcp.f32 %v1427_v19 }
 0x414   : > { %v1430_v36 = vpop.xlane.xlu0 %1429 }
 0x415   : > { %2517 = vrcp.f32 %v1430_v36 }
 0x417   : > { %v2514_v29 = vpop.eup %2513 }
 0x418   : > { %v1433_v56 = vpop.xlane.xlu1 %1432  ;;  %v1527_v52 = vmul.f32 %v2514_v29, %v3652_v7  ;;  %v1526_v33 = vmul.f32 %v2514_v29, %v3650_v26 }
 0x419   : > { %2519 = vrcp.f32 %v1433_v56 }
 0x41a   : > { %v2516_v22 = vpop.eup %2515 }
 0x41b   : > { %v1529_v63 = vmul.f32 %v2516_v22, %v3660_v27  ;;  %v1528_v39 = vmul.f32 %v2516_v22, %v3658_v25 }
 0x41d   : > { %v1436_v23 = vpop.xlane.xlu0 %1435  ;;  %v1567_v5 = vpack.c.bf16 %v1529_v63, %v1527_v52  ;;  %v1566_v24 = vpack.c.bf16 %v1528_v39, %v1526_v33 }
 0x41e   : > { %2521 = vrcp.f32 %v1436_v23 }
 0x41f   : > { %1758 = vmatprep.mubr.bf16.mxu1 %v1567_v5  ;;  %v2518_v45 = vpop.eup %2517 }
 0x420   : > { %1759 = vmatmul.mubr.bf16.gmra.mrb[48].mxu1 %v1566_v24  ;;  %v1439_v1 = vpop.xlane.xlu1 %1438  ;;  %v1531_v35 = vmul.f32 %v2518_v45, %v3672_v50  ;;  %v1530_v27 = vmul.f32 %v2518_v45, %v3670_v8 }
 0x421   : > { %2523 = vrcp.f32 %v1439_v1 }
 0x423   : > { %v2520_v17 = vpop.eup %2519 }
 0x424   : > { %v1533_v7 = vmul.f32 %v2520_v17, %v3680_v54  ;;  %v1532_v26 = vmul.f32 %v2520_v17, %v3678_v2 }
 0x425   : > { %v1442_v15 = vpop.xlane.xlu0 %1441 }
 0x426   : > { %v1569_v25 = vpack.c.bf16 %v1533_v7, %v1531_v35  ;;  %v1568_v59 = vpack.c.bf16 %v1532_v26, %v1530_v27  ;;  %2525 = vrcp.f32 %v1442_v15 }
 0x428   : > { %1768 = vmatprep.mubr.bf16.mxu1 %v1569_v25  ;;  %v1445_v3 = vpop.xlane.xlu1 %1444  ;;  %v2522_v21 = vpop.eup %2521 }
 0x429   : > { %2527 = vrcp.f32 %v1445_v3  ;;  %1769 = vmatmul.mubr.bf16.gmra.mrb[52].mxu1 %v1568_v59  ;;  %v1535_v43 = vmul.f32 %v2522_v21, %v3692_v18  ;;  %v1534_v50 = vmul.f32 %v2522_v21, %v3690_v10 }
 0x42b   : > { %v2524_v55 = vpop.eup %2523 }
 0x42c   : > { %v1537_v42 = vmul.f32 %v2524_v55, %v3698_v48  ;;  %v1536_v54 = vmul.f32 %v2524_v55, %v3696_v60 }
 0x42e   : > { %v1571_v8 = vpack.c.bf16 %v1537_v42, %v1535_v43  ;;  %v1570_v2 = vpack.c.bf16 %v1536_v54, %v1534_v50 }
 0x430   : > { %1778 = vmatprep.mubr.bf16.mxu1 %v1571_v8  ;;  %v2526_v38 = vpop.eup %2525 }
 0x431   : > { %1779 = vmatmul.mubr.bf16.gmra.mrb[56].mxu1 %v1570_v2  ;;  %v1539_v34 = vmul.f32 %v2526_v38, %v3708_v62  ;;  %v1538_v12 = vmul.f32 %v2526_v38, %v3706_v41 }
 0x433   : > { %v2528_v46 = vpop.eup %2527 }
 0x434   : > { %v1541_v49 = vmul.f32 %v2528_v46, %v3714_v28  ;;  %v1540_v18 = vmul.f32 %v2528_v46, %v3712_v61 }
 0x436   : > { %v1573_v48 = vpack.c.bf16 %v1541_v49, %v1539_v34  ;;  %v1572_v16 = vpack.c.bf16 %v1540_v18, %v1538_v12 }
 0x438   : > { %1788 = vmatprep.mubr.bf16.mxu1 %v1573_v48 }
 0x439   : > { %1789 = vmatmul.mubr.bf16.gmra.mrb[60].mxu1 %v1572_v16 }
 0x44f   : > { %v1640_v10 = vpop.f32.mrb[0].mxu1 }
 0x450   : > { %1799 = vst [vmem:[%s3767_s26] sm:$0xff] %v1640_v10  ;;  %v1642_v60 = vpop.f32.mrb[1].mxu1 }
 0x451   : > { %1800 = vst [vmem:[%s3767_s26 + $0x8] sm:$0xff] %v1642_v60  ;;  %v1644_v41 = vpop.f32.mrb[2].mxu1 }
 0x452   : > { %1801 = vst [vmem:[%s3767_s26 + $0x10] sm:$0xff] %v1644_v41  ;;  %v1646_v62 = vpop.f32.mrb[3].mxu1 }
 0x453   : > { %1802 = vst [vmem:[%s3767_s26 + $0x18] sm:$0xff] %v1646_v62 }
 0x459   : > { %v1650_v61 = vpop.f32.mrb[4].mxu1 }
 0x45a   : > { %1803 = vst [vmem:[%s3767_s26 + $0x20] sm:$0xff] %v1650_v61  ;;  %v1652_v28 = vpop.f32.mrb[5].mxu1 }
 0x45b   : > { %1804 = vst [vmem:[%s3767_s26 + $0x28] sm:$0xff] %v1652_v28  ;;  %v1654_v37 = vpop.f32.mrb[6].mxu1 }
 0x45c   : > { %1805 = vst [vmem:[%s3767_s26 + $0x30] sm:$0xff] %v1654_v37  ;;  %v1656_v11 = vpop.f32.mrb[7].mxu1 }
 0x45d   : > { %1806 = vst [vmem:[%s3767_s26 + $0x38] sm:$0xff] %v1656_v11 }
 0x462   : > { %v1660_v6 = vpop.f32.mrb[8].mxu1 }
 0x463   : > { %1807 = vst [vmem:[%s3767_s26 + $0x40] sm:$0xff] %v1660_v6  ;;  %v1662_v4 = vpop.f32.mrb[9].mxu1 }
 0x464   : > { %1808 = vst [vmem:[%s3767_s26 + $0x48] sm:$0xff] %v1662_v4  ;;  %v1664_v20 = vpop.f32.mrb[10].mxu1 }
 0x465   : > { %1809 = vst [vmem:[%s3767_s26 + $0x50] sm:$0xff] %v1664_v20  ;;  %v1666_v32 = vpop.f32.mrb[11].mxu1 }
 0x466   : > { %1810 = vst [vmem:[%s3767_s26 + $0x58] sm:$0xff] %v1666_v32 }
 0x46a   : > { %v1670_v14 = vpop.f32.mrb[12].mxu1 }
 0x46b   : > { %1811 = vst [vmem:[%s3767_s26 + $0x60] sm:$0xff] %v1670_v14  ;;  %v1672_v9 = vpop.f32.mrb[13].mxu1 }
 0x46c   : > { %1812 = vst [vmem:[%s3767_s26 + $0x68] sm:$0xff] %v1672_v9  ;;  %v1674_v57 = vpop.f32.mrb[14].mxu1 }
 0x46d   : > { %1813 = vst [vmem:[%s3767_s26 + $0x70] sm:$0xff] %v1674_v57  ;;  %v1676_v0 = vpop.f32.mrb[15].mxu1 }
 0x46e   : > { %1814 = vst [vmem:[%s3767_s26 + $0x78] sm:$0xff] %v1676_v0 }
 0x472   : > { %v1680_v40 = vpop.f32.mrb[16].mxu1 }
 0x473   : > { %1815 = vst [vmem:[%s3767_s26 + $0x80] sm:$0xff] %v1680_v40  ;;  %v1682_v31 = vpop.f32.mrb[17].mxu1 }
 0x474   : > { %1816 = vst [vmem:[%s3767_s26 + $0x88] sm:$0xff] %v1682_v31  ;;  %v1684_v58 = vpop.f32.mrb[18].mxu1 }
 0x475   : > { %1817 = vst [vmem:[%s3767_s26 + $0x90] sm:$0xff] %v1684_v58  ;;  %v1686_v47 = vpop.f32.mrb[19].mxu1 }
 0x476   : > { %1818 = vst [vmem:[%s3767_s26 + $0x98] sm:$0xff] %v1686_v47 }
 0x47a   : > { %v1690_v44 = vpop.f32.mrb[20].mxu1 }
 0x47b   : > { %1819 = vst [vmem:[%s3767_s26 + $0xa0] sm:$0xff] %v1690_v44  ;;  %v1692_v30 = vpop.f32.mrb[21].mxu1 }
 0x47c   : > { %1820 = vst [vmem:[%s3767_s26 + $0xa8] sm:$0xff] %v1692_v30  ;;  %v1694_v13 = vpop.f32.mrb[22].mxu1 }
 0x47d   : > { %1821 = vst [vmem:[%s3767_s26 + $0xb0] sm:$0xff] %v1694_v13  ;;  %v1696_v53 = vpop.f32.mrb[23].mxu1 }
 0x47e   : > { %1822 = vst [vmem:[%s3767_s26 + $0xb8] sm:$0xff] %v1696_v53 }
 0x482   : > { %v1700_v51 = vpop.f32.mrb[24].mxu1 }
 0x483   : > { %1823 = vst [vmem:[%s3767_s26 + $0xc0] sm:$0xff] %v1700_v51  ;;  %v1702_v19 = vpop.f32.mrb[25].mxu1 }
 0x484   : > { %1824 = vst [vmem:[%s3767_s26 + $0xc8] sm:$0xff] %v1702_v19  ;;  %v1704_v36 = vpop.f32.mrb[26].mxu1 }
 0x485   : > { %1825 = vst [vmem:[%s3767_s26 + $0xd0] sm:$0xff] %v1704_v36  ;;  %v1706_v29 = vpop.f32.mrb[27].mxu1 }
 0x486   : > { %1826 = vst [vmem:[%s3767_s26 + $0xd8] sm:$0xff] %v1706_v29 }
 0x48a   : > { %v1710_v56 = vpop.f32.mrb[28].mxu1 }
 0x48b   : > { %1827 = vst [vmem:[%s3767_s26 + $0xe0] sm:$0xff] %v1710_v56  ;;  %v1712_v22 = vpop.f32.mrb[29].mxu1 }
 0x48c   : > { %1828 = vst [vmem:[%s3767_s26 + $0xe8] sm:$0xff] %v1712_v22  ;;  %v1714_v52 = vpop.f32.mrb[30].mxu1 }
 0x48d   : > { %1829 = vst [vmem:[%s3767_s26 + $0xf0] sm:$0xff] %v1714_v52  ;;  %v1716_v63 = vpop.f32.mrb[31].mxu1 }
 0x48e   : > { %1830 = vst [vmem:[%s3767_s26 + $0xf8] sm:$0xff] %v1716_v63 }
 0x492   : > { %v1720_v33 = vpop.f32.mrb[32].mxu1 }
 0x493   : > { %1831 = vst [vmem:[%s3767_s26 + $0x100] sm:$0xff] %v1720_v33  ;;  %v1722_v39 = vpop.f32.mrb[33].mxu1 }
 0x494   : > { %1832 = vst [vmem:[%s3767_s26 + $0x108] sm:$0xff] %v1722_v39  ;;  %v1724_v23 = vpop.f32.mrb[34].mxu1 }
 0x495   : > { %1833 = vst [vmem:[%s3767_s26 + $0x110] sm:$0xff] %v1724_v23  ;;  %v1726_v5 = vpop.f32.mrb[35].mxu1 }
 0x496   : > { %1834 = vst [vmem:[%s3767_s26 + $0x118] sm:$0xff] %v1726_v5 }
 0x49a   : > { %v1730_v24 = vpop.f32.mrb[36].mxu1 }
 0x49b   : > { %1835 = vst [vmem:[%s3767_s26 + $0x120] sm:$0xff] %v1730_v24  ;;  %v1732_v1 = vpop.f32.mrb[37].mxu1 }
 0x49c   : > { %1836 = vst [vmem:[%s3767_s26 + $0x128] sm:$0xff] %v1732_v1  ;;  %v1734_v45 = vpop.f32.mrb[38].mxu1 }
 0x49d   : > { %1837 = vst [vmem:[%s3767_s26 + $0x130] sm:$0xff] %v1734_v45  ;;  %v1736_v17 = vpop.f32.mrb[39].mxu1 }
 0x49e   : > { %1838 = vst [vmem:[%s3767_s26 + $0x138] sm:$0xff] %v1736_v17 }
 0x4a2   : > { %v1740_v15 = vpop.f32.mrb[40].mxu1 }
 0x4a3   : > { %1839 = vst [vmem:[%s3767_s26 + $0x140] sm:$0xff] %v1740_v15  ;;  %v1742_v35 = vpop.f32.mrb[41].mxu1 }
 0x4a4   : > { %1840 = vst [vmem:[%s3767_s26 + $0x148] sm:$0xff] %v1742_v35  ;;  %v1744_v7 = vpop.f32.mrb[42].mxu1 }
 0x4a5   : > { %1841 = vst [vmem:[%s3767_s26 + $0x150] sm:$0xff] %v1744_v7  ;;  %v1746_v27 = vpop.f32.mrb[43].mxu1 }
 0x4a6   : > { %1842 = vst [vmem:[%s3767_s26 + $0x158] sm:$0xff] %v1746_v27 }
 0x4aa   : > { %v1750_v26 = vpop.f32.mrb[44].mxu1 }
 0x4ab   : > { %1843 = vst [vmem:[%s3767_s26 + $0x160] sm:$0xff] %v1750_v26  ;;  %v1752_v25 = vpop.f32.mrb[45].mxu1 }
 0x4ac   : > { %1844 = vst [vmem:[%s3767_s26 + $0x168] sm:$0xff] %v1752_v25  ;;  %v1754_v59 = vpop.f32.mrb[46].mxu1 }
 0x4ad   : > { %1845 = vst [vmem:[%s3767_s26 + $0x170] sm:$0xff] %v1754_v59  ;;  %v1756_v3 = vpop.f32.mrb[47].mxu1 }
 0x4ae   : > { %1846 = vst [vmem:[%s3767_s26 + $0x178] sm:$0xff] %v1756_v3 }
 0x4f3   : > { %v1760_v21 = vpop.f32.mrb[48].mxu1 }
 0x4f4   : > { %1847 = vst [vmem:[%s3767_s26 + $0x180] sm:$0xff] %v1760_v21  ;;  %v1762_v55 = vpop.f32.mrb[49].mxu1 }
 0x4f5   : > { %1848 = vst [vmem:[%s3767_s26 + $0x188] sm:$0xff] %v1762_v55  ;;  %v1764_v43 = vpop.f32.mrb[50].mxu1 }
 0x4f6   : > { %1849 = vst [vmem:[%s3767_s26 + $0x190] sm:$0xff] %v1764_v43  ;;  %v1766_v42 = vpop.f32.mrb[51].mxu1 }
 0x4f7   : > { %1850 = vst [vmem:[%s3767_s26 + $0x198] sm:$0xff] %v1766_v42 }
 0x4fc   : > { %v1770_v50 = vpop.f32.mrb[52].mxu1 }
 0x4fd   : > { %1851 = vst [vmem:[%s3767_s26 + $0x1a0] sm:$0xff] %v1770_v50  ;;  %v1772_v54 = vpop.f32.mrb[53].mxu1 }
 0x4fe   : > { %1852 = vst [vmem:[%s3767_s26 + $0x1a8] sm:$0xff] %v1772_v54  ;;  %v1774_v8 = vpop.f32.mrb[54].mxu1 }
 0x4ff   : > { %1853 = vst [vmem:[%s3767_s26 + $0x1b0] sm:$0xff] %v1774_v8  ;;  %v1776_v2 = vpop.f32.mrb[55].mxu1 }
 0x500   : > { %1854 = vst [vmem:[%s3767_s26 + $0x1b8] sm:$0xff] %v1776_v2 }
 0x504   : > { %v1780_v38 = vpop.f32.mrb[56].mxu1 }
 0x505   : > { %1855 = vst [vmem:[%s3767_s26 + $0x1c0] sm:$0xff] %v1780_v38  ;;  %v1782_v46 = vpop.f32.mrb[57].mxu1 }
 0x506   : > { %1856 = vst [vmem:[%s3767_s26 + $0x1c8] sm:$0xff] %v1782_v46  ;;  %v1784_v34 = vpop.f32.mrb[58].mxu1 }
 0x507   : > { %1857 = vst [vmem:[%s3767_s26 + $0x1d0] sm:$0xff] %v1784_v34  ;;  %v1786_v49 = vpop.f32.mrb[59].mxu1 }
 0x508   : > { %1858 = vst [vmem:[%s3767_s26 + $0x1d8] sm:$0xff] %v1786_v49 }
 0x50c   : > { %v1790_v12 = vpop.f32.mrb[60].mxu1 }
 0x50d   : > { %1859 = vst [vmem:[%s3767_s26 + $0x1e0] sm:$0xff] %v1790_v12  ;;  %v1792_v18 = vpop.f32.mrb[61].mxu1 }
 0x50e   : > { %1860 = vst [vmem:[%s3767_s26 + $0x1e8] sm:$0xff] %v1792_v18  ;;  %v1794_v48 = vpop.f32.mrb[62].mxu1 }
 0x50f   : > { %1861 = vst [vmem:[%s3767_s26 + $0x1f0] sm:$0xff] %v1794_v48  ;;  %v1796_v16 = vpop.f32.mrb[63].mxu1 }
 0x510   : > { %1862 = vst [vmem:[%s3767_s26 + $0x1f8] sm:$0xff] %v1796_v16 }
 0x511   : > { %2632 = shalt.err (!%p2629_p13)
}
 0x512   : > { %s2633_s30 = scalar_lea.hbm %s3835_s6, 8192  ;;  %s2637_s13 = scalar_lea.hbm %s3893_s4, 16384 }
 0x513   : > { %p2634_p11 = scmp.ne.s32.totalorder %s3835_s6, %s2633_s30  ;;  %p2638_p7 = scmp.lt.u32.totalorder %s3835_s6, %s3893_s4 }
 0x514   : > { %p2639_p4 = scmp.lt.u32.totalorder %s2637_s13, %s2633_s30  ;;  %p2641_p0 = scmp.lt.u32.totalorder %s2633_s30, %s3835_s6 }
 0x515   : > { %p2635_p2 = pnand %p2634_p11, %p4029_p10 }
 0x516   : > { %p2640_p3 = por %p2639_p4, %p2638_p7 }
 0x517   : > { %p2636_p5 = pneg %p2635_p2 }
 0x518   : > { %p2642_p8 = por %p2641_p0, %p2640_p3 }
 0x51a   : > { %p2643_p9 = pnand %p2642_p8, %p2636_p5 }
 0x51c   : > { %2646 = shalt.err (!%p2643_p9)
}
 0x51d   : > { %s2713_s14 = smov 256   ;;  %s2714_s21 = smov 16  }
 0x51e   : > { %2043 = dma.vmem_to_hbm [thread:$0]  (%p4029_p10), %s3837_s22, 8192, %s3835_s6, %s1864_s17, %s2713_s14, %s2713_s14, %s2714_s21  }
 0x51f PF: > { %s1895_s12 = sand.u32 1, %s2685_s15   ;;  %p4030_p12 = scmp.ne.s32.totalorder %s3943_s29, 0 }
 0x520   : > { %p4031_p1 = scmp.ge.s32.totalorder %s2705_s19, 2  ;;  %s1896_s20 = scalar_lea.sflag [#allocation8], %s1895_s12 }
 0x522   : > { %p2056_p6 = pnand %p4031_p1, %p4030_p12 }
 0x524   : > { %2680 = dma.done.wait (!%p2056_p6), %s1896_s20, 8192  }
 0x525   : > { %2682 = vsyncadd (!%p2056_p6), %s1896_s20, 4294959104  ;;  %s24_s19 = sadd.s32 1, %s2705_s19   ;;  %s4032_s26 = sld [smem:[#allocation18_spill]] }
 0x526   : > { %p21_p13 = scmp.ge.s32.totalorder %s24_s19, 4   ;;  %s4033_s17 = sld [smem:[#allocation16_spill]] }
 0x527   : > { %s4034_s18 = sld [smem:[#allocation17_spill]]  ;;  %s4035_s15 = smov %s2689_s0 }
 0x528   : > { %s4036_s0 = smov %s2693_s16  ;;  %23 = sbr.rel (!%p21_p13) target bundleno = 10 (0xa), region = 105 }
 0x52b   : > { %s4037_s16 = smov %s4032_s26 }
 0x52f   :  { %1901 = vsyncpa [#allocation7], 1 }
 0x530   :  { %1903 = vsyncpa [#allocation7 + $0x1], 1 }
 0x531   :  { %1904 = vsyncpa [#allocation10], 1 }
 0x532   :  { %1906 = vsyncpa [#allocation10 + $0x1], 1 }
 0x533   :  { %1907 = vsyncpa [#allocation8], 1 }
 0x534   :  { %1909 = vsyncpa [#allocation8 + $0x1], 1 }

</bundles_post_ra>
